<compile_context>
chip_gen: v5e
topology: v5e:2x2
jax: 0.10.0
libtpu: 0.0.40
codegen_flags: <defaults>
</compile_context>

<pallas_src>
import jax
import jax.numpy as jnp
import numpy as np
from jax import lax
from jax.experimental import pallas as pl
from jax.experimental.pallas import tpu as pltpu

H = W = 28          # input spatial size (fixed by the 16*4*4 flatten in the fc head)
K = 5               # conv kernel size
HO1 = H - K + 1     # 24  conv1 output height / width
W1P = HO1 // 2      # 12  pool1 output height / width
HO2 = W1P - K + 1   # 8   conv2 output height / width
W2P = HO2 // 2      # 4   pool2 output height / width
C1 = 8              # conv1 out channels padded 6 -> 8
C2 = 16             # conv2 out channels
LANES1 = HO1 * C1   # 192 conv1 lane width (parity, w-pair, channel)
LANES2 = HO2 * C2   # 128 conv2 lane width
FC_PAD = 128        # lane-padded width of every fc matrix and of the output


def _sigmoid(x):
    # 1/(1+exp(-x)) == 0.5*tanh(0.5*x)+0.5 ; tanh runs in the EUP slot.
    return 0.5 * jnp.tanh(0.5 * x) + 0.5


def lenet_kernel(x_ref, w1b_ref, b1_ref, w2b_ref, b2_ref,
                 fw1_ref, fb1_ref, fw2_ref, fb2_ref, fw3_ref, fb3_ref,
                 out_ref):
    bt = x_ref.shape[0]
    x = x_ref[...]                                           # (bt, 28, 28)

    # ---- conv1: 5 banded matmuls (one per kernel row), batch folded into M.
    # Result lanes are ordered (w-parity, w-pair, channel): pw*96 + wp*8 + co.
    acc1 = jnp.zeros((bt * HO1, LANES1), jnp.float32)
    for kh in range(K):
        lhs = x[:, kh:kh + HO1, :].reshape(bt * HO1, W)      # (bt*24, 28)
        acc1 = acc1 + jnp.dot(lhs, w1b_ref[kh],
                              preferred_element_type=jnp.float32)
    y1 = _sigmoid(acc1 + b1_ref[...])                        # (bt*24, 192)

    # ---- pool1: 2x2 / stride 2.  H: pairwise sublane max; W: lane-half max.
    y1 = y1.reshape(bt, W1P, 2, LANES1)
    y1 = jnp.maximum(y1[:, :, 0, :], y1[:, :, 1, :])         # (bt, 12, 192)
    y1 = jnp.maximum(y1[..., :W1P * C1], y1[..., W1P * C1:])  # (bt, 12, 96)

    # ---- conv2: 5 banded matmuls, lanes (w-parity, w-pair, channel).
    acc2 = jnp.zeros((bt * HO2, LANES2), jnp.float32)
    for kh in range(K):
        lhs = y1[:, kh:kh + HO2, :].reshape(bt * HO2, W1P * C1)   # (bt*8, 96)
        acc2 = acc2 + jnp.dot(lhs, w2b_ref[kh],
                              preferred_element_type=jnp.float32)
    y2 = _sigmoid(acc2 + b2_ref[...])                        # (bt*8, 128)

    # ---- pool2 ----
    y2 = y2.reshape(bt, W2P, 2, LANES2)
    y2 = jnp.maximum(y2[:, :, 0, :], y2[:, :, 1, :])         # (bt, 4, 128)
    y2 = jnp.maximum(y2[..., :W2P * C2], y2[..., W2P * C2:])  # (bt, 4, 64)

    # ---- fc head: batch in M, every operand 128 lanes wide ----
    f = y2.reshape(bt, W2P * W2P * C2)                       # (bt, 256) (h,w,c) flatten
    h1 = _sigmoid(jnp.dot(f, fw1_ref[...],
                          preferred_element_type=jnp.float32) + fb1_ref[...])
    h2 = _sigmoid(jnp.dot(h1, fw2_ref[...],
                          preferred_element_type=jnp.float32) + fb2_ref[...])
    out_ref[0] = jnp.dot(h2, fw3_ref[...],
                         preferred_element_type=jnp.float32) + fb3_ref[...]


def _pack_params(params):
    """Repack the PyTorch-layout parameters for the kernel.

    The conv weights become per-kernel-row band matrices so each conv is five
    accumulated matmuls over raw image rows (no im2col).  Band columns are
    ordered (output-w parity, w-pair, channel) so the stride-2 W pool is a max
    of the two contiguous lane halves.  Padded channels / rows are zero so the
    sigmoid(0)=0.5 values they produce stay inert downstream.
    """
    (w1, b1, w2, b2, fw1, fb1, fw2, fb2, fw3, fb3) = [
        jnp.asarray(p, jnp.float32) for p in params]

    # conv1: (6,1,5,5) -> band (5, 28, 192);
    # band[kh, wi, pw*96+wp*8+co] = w1[co,0,kh, wi-(2*wp+pw)] when 0<=kw<5.
    w1k = jnp.pad(jnp.transpose(w1[:, 0], (1, 2, 0)), ((0, 0), (0, 0), (0, 2)))
    wi = jnp.arange(W).reshape(W, 1, 1)
    pw = jnp.arange(2).reshape(1, 2, 1)
    wp = jnp.arange(W1P).reshape(1, 1, W1P)
    kw = wi - (2 * wp + pw)                                   # (28, 2, 12)
    val = ((kw >= 0) & (kw < K)).astype(jnp.float32)
    w1band = (w1k[:, jnp.clip(kw, 0, K - 1), :]               # (5, 28, 2, 12, 8)
              * val[None, :, :, :, None]).reshape(K, W, LANES1)
    b1t = jnp.tile(jnp.pad(b1, (0, 2)), HO1).reshape(1, LANES1)

    # conv2: (16,6,5,5) -> band (5, 96, 128); rows wi*8+ci, cols pw*64+wp*16+co.
    # ci padded 6->8 with zero rows (keeps conv1's 0.5-valued pad channels inert).
    w2k = jnp.pad(jnp.transpose(w2, (2, 3, 1, 0)),
                  ((0, 0), (0, 0), (0, 2), (0, 0)))           # (5,5,8,16)
    wi2 = jnp.arange(W1P).reshape(W1P, 1, 1)
    pw2 = jnp.arange(2).reshape(1, 2, 1)
    wp2 = jnp.arange(W2P).reshape(1, 1, W2P)
    kw2 = wi2 - (2 * wp2 + pw2)                               # (12, 2, 4)
    val2 = ((kw2 >= 0) & (kw2 < K)).astype(jnp.float32)
    band2 = w2k[:, jnp.clip(kw2, 0, K - 1)] * val2[None, :, :, :, None, None]
    w2band = jnp.transpose(band2, (0, 1, 4, 2, 3, 5)).reshape(K, W1P * C1, LANES2)
    b2t = jnp.tile(b2, HO2).reshape(1, LANES2)

    # fc head: fc1 columns permuted from torch's NCHW flatten to the kernel's
    # (h, w, c) flatten; all matrices transposed for right-multiplication and
    # zero-padded to 128 lanes (zero rows keep 0.5-valued pad lanes inert).
    fw1m = jnp.transpose(fw1.reshape(120, C2, W2P, W2P), (2, 3, 1, 0)).reshape(256, 120)
    fw1p = jnp.pad(fw1m, ((0, 0), (0, FC_PAD - 120)))         # (256, 128)
    fb1p = jnp.pad(fb1, (0, FC_PAD - 120)).reshape(1, FC_PAD)
    fw2p = jnp.pad(fw2.T, ((0, FC_PAD - 120), (0, FC_PAD - 84)))   # (128, 128)
    fb2p = jnp.pad(fb2, (0, FC_PAD - 84)).reshape(1, FC_PAD)
    fw3p = jnp.pad(fw3.T, ((0, FC_PAD - 84), (0, FC_PAD - 10)))    # (128, 128)
    fb3p = jnp.pad(fb3, (0, FC_PAD - 10)).reshape(1, FC_PAD)

    return (w1band, b1t, w2band, b2t, fw1p, fb1p, fw2p, fb2p, fw3p, fb3p)


def lenet_forward(x_nchw, params, b_tile=None):
    batch = x_nchw.shape[0]
    x = jnp.asarray(x_nchw, jnp.float32).reshape(batch, H, W)   # Cin == 1
    packed = _pack_params(params)

    if b_tile is None:
        # >= 2 grid steps when the batch allows (two v7x TensorCores); cap the
        # tile so double-buffered blocks stay far below v7x's 64 MiB VMEM.
        b_tile = max(1, min(64, pl.cdiv(batch, 2)))
    n_steps = pl.cdiv(batch, b_tile)
    b_pad = n_steps * b_tile
    if b_pad != batch:
        x = jnp.pad(x, ((0, b_pad - batch), (0, 0), (0, 0)))

    def const_spec(a):
        zeros = (0,) * a.ndim
        return pl.BlockSpec(a.shape, lambda i, _z=zeros: _z)

    in_specs = [pl.BlockSpec((b_tile, H, W), lambda i: (i, 0, 0))]
    in_specs += [const_spec(a) for a in packed]

    out = pl.pallas_call(
        lenet_kernel,
        out_shape=jax.ShapeDtypeStruct((n_steps, b_tile, FC_PAD), jnp.float32),
        grid=(n_steps,),
        in_specs=in_specs,
        out_specs=pl.BlockSpec((1, b_tile, FC_PAD), lambda i: (i, 0, 0)),
        compiler_params=pltpu.CompilerParams(
            dimension_semantics=("parallel",),
            vmem_limit_bytes=32 * 1024 * 1024),
    )(x, *packed)
    return out.reshape(b_pad, FC_PAD)[:batch, :10]


def lenet_reference(x, params):
    """Pure-JAX NCHW reference matching the PyTorch module."""
    (w1, b1, w2, b2, fw1, fb1, fw2, fb2, fw3, fb3) = params
    dn = ('NCHW', 'OIHW', 'NCHW')
    y = lax.conv_general_dilated(x, w1, (1, 1), 'VALID',
                                 dimension_numbers=dn) + b1.reshape(1, 6, 1, 1)
    y = jax.nn.sigmoid(y)
    y = lax.reduce_window(y, -jnp.inf, lax.max, (1, 1, 2, 2), (1, 1, 2, 2), 'VALID')
    y = lax.conv_general_dilated(y, w2, (1, 1), 'VALID',
                                 dimension_numbers=dn) + b2.reshape(1, 16, 1, 1)
    y = jax.nn.sigmoid(y)
    y = lax.reduce_window(y, -jnp.inf, lax.max, (1, 1, 2, 2), (1, 1, 2, 2), 'VALID')
    f = y.reshape(x.shape[0], -1)
    h1 = jax.nn.sigmoid(f @ fw1.T + fb1)
    h2 = jax.nn.sigmoid(h1 @ fw2.T + fb2)
    return h2 @ fw3.T + fb3


if __name__ == "__main__":
    B = 2
    key = jax.random.PRNGKey(0)
    keys = jax.random.split(key, 11)

    def init(k, shape, scale):
        return (scale * jax.random.normal(k, shape)).astype(jnp.float32)

    x = init(keys[0], (B, 1, H, W), 1.0)
    params = (
        init(keys[1], (6, 1, 5, 5), 0.2),     # conv1 weight / bias
        init(keys[2], (6,), 0.1),
        init(keys[3], (16, 6, 5, 5), 0.1),    # conv2 weight / bias
        init(keys[4], (16,), 0.1),
        init(keys[5], (120, 256), 0.05),      # fc1
        init(keys[6], (120,), 0.05),
        init(keys[7], (84, 120), 0.05),       # fc2
        init(keys[8], (84,), 0.05),
        init(keys[9], (10, 84), 0.05),        # fc3
        init(keys[10], (10,), 0.05),
    )

    out = jax.block_until_ready(lenet_forward(x, params))
    ref = jax.block_until_ready(lenet_reference(x, params))

    assert out.shape == (B, 10) and out.dtype == jnp.float32
    np.testing.assert_allclose(np.asarray(out), np.asarray(ref), rtol=1e-4, atol=1e-4)
    print("KERNEL_OK")
</pallas_src>

<mosaic_0001>
module attributes {stable_mosaic.version = 11 : i64} {
  func.func @lenet_kernel(%arg0: i32, %arg1: memref<1x28x28xf32, #tpu.memory_space<vmem>>, %arg2: memref<5x28x192xf32, #tpu.memory_space<vmem>>, %arg3: memref<1x192xf32, #tpu.memory_space<vmem>>, %arg4: memref<5x96x128xf32, #tpu.memory_space<vmem>>, %arg5: memref<1x128xf32, #tpu.memory_space<vmem>>, %arg6: memref<256x128xf32, #tpu.memory_space<vmem>>, %arg7: memref<1x128xf32, #tpu.memory_space<vmem>>, %arg8: memref<128x128xf32, #tpu.memory_space<vmem>>, %arg9: memref<1x128xf32, #tpu.memory_space<vmem>>, %arg10: memref<128x128xf32, #tpu.memory_space<vmem>>, %arg11: memref<1x128xf32, #tpu.memory_space<vmem>>, %arg12: memref<1x1x128xf32, #tpu.memory_space<vmem>>) attributes {dimension_semantics = [#tpu.dimension_semantics<parallel>], iteration_bounds = array<i64: 2>, scalar_prefetch = 0 : i64, scratch_operands = 0 : i64, tpu.core_type = #tpu.core_type<tc>, window_params = [{transform_indices = @transform_0, window_bounds = array<i64: 1, 28, 28>}, {pipeline_mode = #tpu.pipeline_mode<synchronous>, transform_indices = @transform_1, window_bounds = array<i64: 5, 28, 192>}, {pipeline_mode = #tpu.pipeline_mode<synchronous>, transform_indices = @transform_2, window_bounds = array<i64: 1, 192>}, {pipeline_mode = #tpu.pipeline_mode<synchronous>, transform_indices = @transform_3, window_bounds = array<i64: 5, 96, 128>}, {pipeline_mode = #tpu.pipeline_mode<synchronous>, transform_indices = @transform_4, window_bounds = array<i64: 1, 128>}, {pipeline_mode = #tpu.pipeline_mode<synchronous>, transform_indices = @transform_5, window_bounds = array<i64: 256, 128>}, {pipeline_mode = #tpu.pipeline_mode<synchronous>, transform_indices = @transform_6, window_bounds = array<i64: 1, 128>}, {pipeline_mode = #tpu.pipeline_mode<synchronous>, transform_indices = @transform_7, window_bounds = array<i64: 128, 128>}, {pipeline_mode = #tpu.pipeline_mode<synchronous>, transform_indices = @transform_8, window_bounds = array<i64: 1, 128>}, {pipeline_mode = #tpu.pipeline_mode<synchronous>, transform_indices = @transform_9, window_bounds = array<i64: 128, 128>}, {pipeline_mode = #tpu.pipeline_mode<synchronous>, transform_indices = @transform_10, window_bounds = array<i64: 1, 128>}, {transform_indices = @transform_11, window_bounds = array<i64: 1, 1, 128>}]} {
    %c0 = arith.constant 0 : index
    %c0_0 = arith.constant 0 : index
    %c0_1 = arith.constant 0 : index
    %0 = vector.load %arg1[%c0, %c0_0, %c0_1] : memref<1x28x28xf32, #tpu.memory_space<vmem>>, vector<1x28x28xf32>
    %cst = arith.constant 0.000000e+00 : f32
    %1 = vector.broadcast %cst : f32 to vector<24x192xf32>
    %2 = vector.extract_strided_slice %0 {offsets = [0, 0, 0], sizes = [1, 24, 28], strides = [1, 1, 1]} : vector<1x28x28xf32> to vector<1x24x28xf32>
    %3 = vector.shape_cast %2 : vector<1x24x28xf32> to vector<24x28xf32>
    %c0_2 = arith.constant 0 : index
    %c0_3 = arith.constant 0 : index
    %c0_4 = arith.constant 0 : index
    %4 = vector.load %arg2[%c0_2, %c0_3, %c0_4] : memref<5x28x192xf32, #tpu.memory_space<vmem>>, vector<1x28x192xf32>
    %5 = vector.shape_cast %4 : vector<1x28x192xf32> to vector<28x192xf32>
    %cst_5 = arith.constant dense<0.000000e+00> : vector<24x192xf32>
    %6 = tpu.matmul %3, %5, %cst_5 {dimension_numbers = #tpu.dot_dimension_numbers<[1], [0], [0], [1], [0, 0, 1, 1], [], []>} : vector<24x28xf32>, vector<28x192xf32>, vector<24x192xf32> -> vector<24x192xf32>
    %7 = arith.addf %1, %6 : vector<24x192xf32>
    %8 = vector.extract_strided_slice %0 {offsets = [0, 1, 0], sizes = [1, 24, 28], strides = [1, 1, 1]} : vector<1x28x28xf32> to vector<1x24x28xf32>
    %9 = vector.shape_cast %8 : vector<1x24x28xf32> to vector<24x28xf32>
    %c1 = arith.constant 1 : index
    %c0_6 = arith.constant 0 : index
    %c0_7 = arith.constant 0 : index
    %10 = vector.load %arg2[%c1, %c0_6, %c0_7] : memref<5x28x192xf32, #tpu.memory_space<vmem>>, vector<1x28x192xf32>
    %11 = vector.shape_cast %10 : vector<1x28x192xf32> to vector<28x192xf32>
    %cst_8 = arith.constant dense<0.000000e+00> : vector<24x192xf32>
    %12 = tpu.matmul %9, %11, %cst_8 {dimension_numbers = #tpu.dot_dimension_numbers<[1], [0], [0], [1], [0, 0, 1, 1], [], []>} : vector<24x28xf32>, vector<28x192xf32>, vector<24x192xf32> -> vector<24x192xf32>
    %13 = arith.addf %7, %12 : vector<24x192xf32>
    %14 = vector.extract_strided_slice %0 {offsets = [0, 2, 0], sizes = [1, 24, 28], strides = [1, 1, 1]} : vector<1x28x28xf32> to vector<1x24x28xf32>
    %15 = vector.shape_cast %14 : vector<1x24x28xf32> to vector<24x28xf32>
    %c2 = arith.constant 2 : index
    %c0_9 = arith.constant 0 : index
    %c0_10 = arith.constant 0 : index
    %16 = vector.load %arg2[%c2, %c0_9, %c0_10] : memref<5x28x192xf32, #tpu.memory_space<vmem>>, vector<1x28x192xf32>
    %17 = vector.shape_cast %16 : vector<1x28x192xf32> to vector<28x192xf32>
    %cst_11 = arith.constant dense<0.000000e+00> : vector<24x192xf32>
    %18 = tpu.matmul %15, %17, %cst_11 {dimension_numbers = #tpu.dot_dimension_numbers<[1], [0], [0], [1], [0, 0, 1, 1], [], []>} : vector<24x28xf32>, vector<28x192xf32>, vector<24x192xf32> -> vector<24x192xf32>
    %19 = arith.addf %13, %18 : vector<24x192xf32>
    %20 = vector.extract_strided_slice %0 {offsets = [0, 3, 0], sizes = [1, 24, 28], strides = [1, 1, 1]} : vector<1x28x28xf32> to vector<1x24x28xf32>
    %21 = vector.shape_cast %20 : vector<1x24x28xf32> to vector<24x28xf32>
    %c3 = arith.constant 3 : index
    %c0_12 = arith.constant 0 : index
    %c0_13 = arith.constant 0 : index
    %22 = vector.load %arg2[%c3, %c0_12, %c0_13] : memref<5x28x192xf32, #tpu.memory_space<vmem>>, vector<1x28x192xf32>
    %23 = vector.shape_cast %22 : vector<1x28x192xf32> to vector<28x192xf32>
    %cst_14 = arith.constant dense<0.000000e+00> : vector<24x192xf32>
    %24 = tpu.matmul %21, %23, %cst_14 {dimension_numbers = #tpu.dot_dimension_numbers<[1], [0], [0], [1], [0, 0, 1, 1], [], []>} : vector<24x28xf32>, vector<28x192xf32>, vector<24x192xf32> -> vector<24x192xf32>
    %25 = arith.addf %19, %24 : vector<24x192xf32>
    %26 = vector.extract_strided_slice %0 {offsets = [0, 4, 0], sizes = [1, 24, 28], strides = [1, 1, 1]} : vector<1x28x28xf32> to vector<1x24x28xf32>
    %27 = vector.shape_cast %26 : vector<1x24x28xf32> to vector<24x28xf32>
    %c4 = arith.constant 4 : index
    %c0_15 = arith.constant 0 : index
    %c0_16 = arith.constant 0 : index
    %28 = vector.load %arg2[%c4, %c0_15, %c0_16] : memref<5x28x192xf32, #tpu.memory_space<vmem>>, vector<1x28x192xf32>
    %29 = vector.shape_cast %28 : vector<1x28x192xf32> to vector<28x192xf32>
    %cst_17 = arith.constant dense<0.000000e+00> : vector<24x192xf32>
    %30 = tpu.matmul %27, %29, %cst_17 {dimension_numbers = #tpu.dot_dimension_numbers<[1], [0], [0], [1], [0, 0, 1, 1], [], []>} : vector<24x28xf32>, vector<28x192xf32>, vector<24x192xf32> -> vector<24x192xf32>
    %31 = arith.addf %25, %30 : vector<24x192xf32>
    %c0_18 = arith.constant 0 : index
    %c0_19 = arith.constant 0 : index
    %32 = vector.load %arg3[%c0_18, %c0_19] : memref<1x192xf32, #tpu.memory_space<vmem>>, vector<1x192xf32>
    %33 = vector.broadcast %32 : vector<1x192xf32> to vector<24x192xf32>
    %34 = arith.addf %31, %33 : vector<24x192xf32>
    %cst_20 = arith.constant 5.000000e-01 : f32
    %35 = vector.broadcast %cst_20 : f32 to vector<24x192xf32>
    %36 = arith.mulf %35, %34 : vector<24x192xf32>
    %37 = math.tanh %36 : vector<24x192xf32>
    %cst_21 = arith.constant 5.000000e-01 : f32
    %38 = vector.broadcast %cst_21 : f32 to vector<24x192xf32>
    %39 = arith.mulf %38, %37 : vector<24x192xf32>
    %cst_22 = arith.constant 5.000000e-01 : f32
    %40 = vector.broadcast %cst_22 : f32 to vector<24x192xf32>
    %41 = arith.addf %39, %40 : vector<24x192xf32>
    %42 = vector.shape_cast %41 : vector<24x192xf32> to vector<1x12x2x192xf32>
    %43 = vector.extract_strided_slice %42 {offsets = [0, 0, 0, 0], sizes = [1, 12, 1, 192], strides = [1, 1, 1, 1]} : vector<1x12x2x192xf32> to vector<1x12x1x192xf32>
    %44 = vector.shape_cast %43 : vector<1x12x1x192xf32> to vector<1x12x192xf32>
    %45 = vector.extract_strided_slice %42 {offsets = [0, 0, 1, 0], sizes = [1, 12, 1, 192], strides = [1, 1, 1, 1]} : vector<1x12x2x192xf32> to vector<1x12x1x192xf32>
    %46 = vector.shape_cast %45 : vector<1x12x1x192xf32> to vector<1x12x192xf32>
    %47 = arith.maximumf %44, %46 : vector<1x12x192xf32>
    %48 = vector.extract_strided_slice %47 {offsets = [0, 0, 0], sizes = [1, 12, 96], strides = [1, 1, 1]} : vector<1x12x192xf32> to vector<1x12x96xf32>
    %49 = vector.extract_strided_slice %47 {offsets = [0, 0, 96], sizes = [1, 12, 96], strides = [1, 1, 1]} : vector<1x12x192xf32> to vector<1x12x96xf32>
    %50 = arith.maximumf %48, %49 : vector<1x12x96xf32>
    %cst_23 = arith.constant 0.000000e+00 : f32
    %51 = vector.broadcast %cst_23 : f32 to vector<8x128xf32>
    %52 = vector.extract_strided_slice %50 {offsets = [0, 0, 0], sizes = [1, 8, 96], strides = [1, 1, 1]} : vector<1x12x96xf32> to vector<1x8x96xf32>
    %53 = vector.shape_cast %52 : vector<1x8x96xf32> to vector<8x96xf32>
    %c0_24 = arith.constant 0 : index
    %c0_25 = arith.constant 0 : index
    %c0_26 = arith.constant 0 : index
    %54 = vector.load %arg4[%c0_24, %c0_25, %c0_26] : memref<5x96x128xf32, #tpu.memory_space<vmem>>, vector<1x96x128xf32>
    %55 = vector.shape_cast %54 : vector<1x96x128xf32> to vector<96x128xf32>
    %cst_27 = arith.constant dense<0.000000e+00> : vector<8x128xf32>
    %56 = tpu.matmul %53, %55, %cst_27 {dimension_numbers = #tpu.dot_dimension_numbers<[1], [0], [0], [1], [0, 0, 1, 1], [], []>} : vector<8x96xf32>, vector<96x128xf32>, vector<8x128xf32> -> vector<8x128xf32>
    %57 = arith.addf %51, %56 : vector<8x128xf32>
    %58 = vector.extract_strided_slice %50 {offsets = [0, 1, 0], sizes = [1, 8, 96], strides = [1, 1, 1]} : vector<1x12x96xf32> to vector<1x8x96xf32>
    %59 = vector.shape_cast %58 : vector<1x8x96xf32> to vector<8x96xf32>
    %c1_28 = arith.constant 1 : index
    %c0_29 = arith.constant 0 : index
    %c0_30 = arith.constant 0 : index
    %60 = vector.load %arg4[%c1_28, %c0_29, %c0_30] : memref<5x96x128xf32, #tpu.memory_space<vmem>>, vector<1x96x128xf32>
    %61 = vector.shape_cast %60 : vector<1x96x128xf32> to vector<96x128xf32>
    %cst_31 = arith.constant dense<0.000000e+00> : vector<8x128xf32>
    %62 = tpu.matmul %59, %61, %cst_31 {dimension_numbers = #tpu.dot_dimension_numbers<[1], [0], [0], [1], [0, 0, 1, 1], [], []>} : vector<8x96xf32>, vector<96x128xf32>, vector<8x128xf32> -> vector<8x128xf32>
    %63 = arith.addf %57, %62 : vector<8x128xf32>
    %64 = vector.extract_strided_slice %50 {offsets = [0, 2, 0], sizes = [1, 8, 96], strides = [1, 1, 1]} : vector<1x12x96xf32> to vector<1x8x96xf32>
    %65 = vector.shape_cast %64 : vector<1x8x96xf32> to vector<8x96xf32>
    %c2_32 = arith.constant 2 : index
    %c0_33 = arith.constant 0 : index
    %c0_34 = arith.constant 0 : index
    %66 = vector.load %arg4[%c2_32, %c0_33, %c0_34] : memref<5x96x128xf32, #tpu.memory_space<vmem>>, vector<1x96x128xf32>
    %67 = vector.shape_cast %66 : vector<1x96x128xf32> to vector<96x128xf32>
    %cst_35 = arith.constant dense<0.000000e+00> : vector<8x128xf32>
    %68 = tpu.matmul %65, %67, %cst_35 {dimension_numbers = #tpu.dot_dimension_numbers<[1], [0], [0], [1], [0, 0, 1, 1], [], []>} : vector<8x96xf32>, vector<96x128xf32>, vector<8x128xf32> -> vector<8x128xf32>
    %69 = arith.addf %63, %68 : vector<8x128xf32>
    %70 = vector.extract_strided_slice %50 {offsets = [0, 3, 0], sizes = [1, 8, 96], strides = [1, 1, 1]} : vector<1x12x96xf32> to vector<1x8x96xf32>
    %71 = vector.shape_cast %70 : vector<1x8x96xf32> to vector<8x96xf32>
    %c3_36 = arith.constant 3 : index
    %c0_37 = arith.constant 0 : index
    %c0_38 = arith.constant 0 : index
    %72 = vector.load %arg4[%c3_36, %c0_37, %c0_38] : memref<5x96x128xf32, #tpu.memory_space<vmem>>, vector<1x96x128xf32>
    %73 = vector.shape_cast %72 : vector<1x96x128xf32> to vector<96x128xf32>
    %cst_39 = arith.constant dense<0.000000e+00> : vector<8x128xf32>
    %74 = tpu.matmul %71, %73, %cst_39 {dimension_numbers = #tpu.dot_dimension_numbers<[1], [0], [0], [1], [0, 0, 1, 1], [], []>} : vector<8x96xf32>, vector<96x128xf32>, vector<8x128xf32> -> vector<8x128xf32>
    %75 = arith.addf %69, %74 : vector<8x128xf32>
    %76 = vector.extract_strided_slice %50 {offsets = [0, 4, 0], sizes = [1, 8, 96], strides = [1, 1, 1]} : vector<1x12x96xf32> to vector<1x8x96xf32>
    %77 = vector.shape_cast %76 : vector<1x8x96xf32> to vector<8x96xf32>
    %c4_40 = arith.constant 4 : index
    %c0_41 = arith.constant 0 : index
    %c0_42 = arith.constant 0 : index
    %78 = vector.load %arg4[%c4_40, %c0_41, %c0_42] : memref<5x96x128xf32, #tpu.memory_space<vmem>>, vector<1x96x128xf32>
    %79 = vector.shape_cast %78 : vector<1x96x128xf32> to vector<96x128xf32>
    %cst_43 = arith.constant dense<0.000000e+00> : vector<8x128xf32>
    %80 = tpu.matmul %77, %79, %cst_43 {dimension_numbers = #tpu.dot_dimension_numbers<[1], [0], [0], [1], [0, 0, 1, 1], [], []>} : vector<8x96xf32>, vector<96x128xf32>, vector<8x128xf32> -> vector<8x128xf32>
    %81 = arith.addf %75, %80 : vector<8x128xf32>
    %c0_44 = arith.constant 0 : index
    %c0_45 = arith.constant 0 : index
    %82 = vector.load %arg5[%c0_44, %c0_45] : memref<1x128xf32, #tpu.memory_space<vmem>>, vector<1x128xf32>
    %83 = vector.broadcast %82 : vector<1x128xf32> to vector<8x128xf32>
    %84 = arith.addf %81, %83 : vector<8x128xf32>
    %cst_46 = arith.constant 5.000000e-01 : f32
    %85 = vector.broadcast %cst_46 : f32 to vector<8x128xf32>
    %86 = arith.mulf %85, %84 : vector<8x128xf32>
    %87 = math.tanh %86 : vector<8x128xf32>
    %cst_47 = arith.constant 5.000000e-01 : f32
    %88 = vector.broadcast %cst_47 : f32 to vector<8x128xf32>
    %89 = arith.mulf %88, %87 : vector<8x128xf32>
    %cst_48 = arith.constant 5.000000e-01 : f32
    %90 = vector.broadcast %cst_48 : f32 to vector<8x128xf32>
    %91 = arith.addf %89, %90 : vector<8x128xf32>
    %92 = vector.shape_cast %91 : vector<8x128xf32> to vector<1x4x2x128xf32>
    %93 = vector.extract_strided_slice %92 {offsets = [0, 0, 0, 0], sizes = [1, 4, 1, 128], strides = [1, 1, 1, 1]} : vector<1x4x2x128xf32> to vector<1x4x1x128xf32>
    %94 = vector.shape_cast %93 : vector<1x4x1x128xf32> to vector<1x4x128xf32>
    %95 = vector.extract_strided_slice %92 {offsets = [0, 0, 1, 0], sizes = [1, 4, 1, 128], strides = [1, 1, 1, 1]} : vector<1x4x2x128xf32> to vector<1x4x1x128xf32>
    %96 = vector.shape_cast %95 : vector<1x4x1x128xf32> to vector<1x4x128xf32>
    %97 = arith.maximumf %94, %96 : vector<1x4x128xf32>
    %98 = vector.extract_strided_slice %97 {offsets = [0, 0, 0], sizes = [1, 4, 64], strides = [1, 1, 1]} : vector<1x4x128xf32> to vector<1x4x64xf32>
    %99 = vector.extract_strided_slice %97 {offsets = [0, 0, 64], sizes = [1, 4, 64], strides = [1, 1, 1]} : vector<1x4x128xf32> to vector<1x4x64xf32>
    %100 = arith.maximumf %98, %99 : vector<1x4x64xf32>
    %101 = vector.shape_cast %100 : vector<1x4x64xf32> to vector<1x256xf32>
    %c0_49 = arith.constant 0 : index
    %c0_50 = arith.constant 0 : index
    %102 = vector.load %arg6[%c0_49, %c0_50] : memref<256x128xf32, #tpu.memory_space<vmem>>, vector<256x128xf32>
    %cst_51 = arith.constant dense<0.000000e+00> : vector<1x128xf32>
    %103 = tpu.matmul %101, %102, %cst_51 {dimension_numbers = #tpu.dot_dimension_numbers<[1], [0], [0], [1], [0, 0, 1, 1], [], []>} : vector<1x256xf32>, vector<256x128xf32>, vector<1x128xf32> -> vector<1x128xf32>
    %c0_52 = arith.constant 0 : index
    %c0_53 = arith.constant 0 : index
    %104 = vector.load %arg7[%c0_52, %c0_53] : memref<1x128xf32, #tpu.memory_space<vmem>>, vector<1x128xf32>
    %105 = arith.addf %103, %104 : vector<1x128xf32>
    %cst_54 = arith.constant 5.000000e-01 : f32
    %106 = vector.broadcast %cst_54 : f32 to vector<1x128xf32>
    %107 = arith.mulf %106, %105 : vector<1x128xf32>
    %108 = math.tanh %107 : vector<1x128xf32>
    %cst_55 = arith.constant 5.000000e-01 : f32
    %109 = vector.broadcast %cst_55 : f32 to vector<1x128xf32>
    %110 = arith.mulf %109, %108 : vector<1x128xf32>
    %cst_56 = arith.constant 5.000000e-01 : f32
    %111 = vector.broadcast %cst_56 : f32 to vector<1x128xf32>
    %112 = arith.addf %110, %111 : vector<1x128xf32>
    %c0_57 = arith.constant 0 : index
    %c0_58 = arith.constant 0 : index
    %113 = vector.load %arg8[%c0_57, %c0_58] : memref<128x128xf32, #tpu.memory_space<vmem>>, vector<128x128xf32>
    %cst_59 = arith.constant dense<0.000000e+00> : vector<1x128xf32>
    %114 = tpu.matmul %112, %113, %cst_59 {dimension_numbers = #tpu.dot_dimension_numbers<[1], [0], [0], [1], [0, 0, 1, 1], [], []>} : vector<1x128xf32>, vector<128x128xf32>, vector<1x128xf32> -> vector<1x128xf32>
    %c0_60 = arith.constant 0 : index
    %c0_61 = arith.constant 0 : index
    %115 = vector.load %arg9[%c0_60, %c0_61] : memref<1x128xf32, #tpu.memory_space<vmem>>, vector<1x128xf32>
    %116 = arith.addf %114, %115 : vector<1x128xf32>
    %cst_62 = arith.constant 5.000000e-01 : f32
    %117 = vector.broadcast %cst_62 : f32 to vector<1x128xf32>
    %118 = arith.mulf %117, %116 : vector<1x128xf32>
    %119 = math.tanh %118 : vector<1x128xf32>
    %cst_63 = arith.constant 5.000000e-01 : f32
    %120 = vector.broadcast %cst_63 : f32 to vector<1x128xf32>
    %121 = arith.mulf %120, %119 : vector<1x128xf32>
    %cst_64 = arith.constant 5.000000e-01 : f32
    %122 = vector.broadcast %cst_64 : f32 to vector<1x128xf32>
    %123 = arith.addf %121, %122 : vector<1x128xf32>
    %c0_65 = arith.constant 0 : index
    %c0_66 = arith.constant 0 : index
    %124 = vector.load %arg10[%c0_65, %c0_66] : memref<128x128xf32, #tpu.memory_space<vmem>>, vector<128x128xf32>
    %cst_67 = arith.constant dense<0.000000e+00> : vector<1x128xf32>
    %125 = tpu.matmul %123, %124, %cst_67 {dimension_numbers = #tpu.dot_dimension_numbers<[1], [0], [0], [1], [0, 0, 1, 1], [], []>} : vector<1x128xf32>, vector<128x128xf32>, vector<1x128xf32> -> vector<1x128xf32>
    %c0_68 = arith.constant 0 : index
    %c0_69 = arith.constant 0 : index
    %126 = vector.load %arg11[%c0_68, %c0_69] : memref<1x128xf32, #tpu.memory_space<vmem>>, vector<1x128xf32>
    %127 = arith.addf %125, %126 : vector<1x128xf32>
    %c0_70 = arith.constant 0 : index
    %c0_71 = arith.constant 0 : index
    %c0_72 = arith.constant 0 : index
    %128 = vector.load %arg12[%c0_70, %c0_71, %c0_72] : memref<1x1x128xf32, #tpu.memory_space<vmem>>, vector<1x1x128xf32>
    %129 = vector.shape_cast %128 : vector<1x1x128xf32> to vector<1x128xf32>
    %130 = vector.shape_cast %127 : vector<1x128xf32> to vector<1x1x128xf32>
    tpu.vector_store %arg12[%c0_70, %c0_71, %c0_72], %130 {strides = array<i32>} : memref<1x1x128xf32, #tpu.memory_space<vmem>>, vector<1x1x128xf32>,
    return
  }
  func.func @transform_0(%arg0: i32) -> (i32, i32, i32) {
    %c0_i32 = arith.constant 0 : i32
    %c0_i32_0 = arith.constant 0 : i32
    %c0_i32_1 = arith.constant 0 : i32
    return %arg0, %c0_i32, %c0_i32_0 : i32, i32, i32
  }
  func.func @transform_1(%arg0: i32) -> (i32, i32, i32) {
    %c0_i32 = arith.constant 0 : i32
    %c0_i32_0 = arith.constant 0 : i32
    %c0_i32_1 = arith.constant 0 : i32
    %c0_i32_2 = arith.constant 0 : i32
    return %c0_i32, %c0_i32_0, %c0_i32_1 : i32, i32, i32
  }
  func.func @transform_2(%arg0: i32) -> (i32, i32) {
    %c0_i32 = arith.constant 0 : i32
    %c0_i32_0 = arith.constant 0 : i32
    %c0_i32_1 = arith.constant 0 : i32
    return %c0_i32, %c0_i32_0 : i32, i32
  }
  func.func @transform_3(%arg0: i32) -> (i32, i32, i32) {
    %c0_i32 = arith.constant 0 : i32
    %c0_i32_0 = arith.constant 0 : i32
    %c0_i32_1 = arith.constant 0 : i32
    %c0_i32_2 = arith.constant 0 : i32
    return %c0_i32, %c0_i32_0, %c0_i32_1 : i32, i32, i32
  }
  func.func @transform_4(%arg0: i32) -> (i32, i32) {
    %c0_i32 = arith.constant 0 : i32
    %c0_i32_0 = arith.constant 0 : i32
    %c0_i32_1 = arith.constant 0 : i32
    return %c0_i32, %c0_i32_0 : i32, i32
  }
  func.func @transform_5(%arg0: i32) -> (i32, i32) {
    %c0_i32 = arith.constant 0 : i32
    %c0_i32_0 = arith.constant 0 : i32
    %c0_i32_1 = arith.constant 0 : i32
    return %c0_i32, %c0_i32_0 : i32, i32
  }
  func.func @transform_6(%arg0: i32) -> (i32, i32) {
    %c0_i32 = arith.constant 0 : i32
    %c0_i32_0 = arith.constant 0 : i32
    %c0_i32_1 = arith.constant 0 : i32
    return %c0_i32, %c0_i32_0 : i32, i32
  }
  func.func @transform_7(%arg0: i32) -> (i32, i32) {
    %c0_i32 = arith.constant 0 : i32
    %c0_i32_0 = arith.constant 0 : i32
    %c0_i32_1 = arith.constant 0 : i32
    return %c0_i32, %c0_i32_0 : i32, i32
  }
  func.func @transform_8(%arg0: i32) -> (i32, i32) {
    %c0_i32 = arith.constant 0 : i32
    %c0_i32_0 = arith.constant 0 : i32
    %c0_i32_1 = arith.constant 0 : i32
    return %c0_i32, %c0_i32_0 : i32, i32
  }
  func.func @transform_9(%arg0: i32) -> (i32, i32) {
    %c0_i32 = arith.constant 0 : i32
    %c0_i32_0 = arith.constant 0 : i32
    %c0_i32_1 = arith.constant 0 : i32
    return %c0_i32, %c0_i32_0 : i32, i32
  }
  func.func @transform_10(%arg0: i32) -> (i32, i32) {
    %c0_i32 = arith.constant 0 : i32
    %c0_i32_0 = arith.constant 0 : i32
    %c0_i32_1 = arith.constant 0 : i32
    return %c0_i32, %c0_i32_0 : i32, i32
  }
  func.func @transform_11(%arg0: i32) -> (i32, i32, i32) {
    %c0_i32 = arith.constant 0 : i32
    %c0_i32_0 = arith.constant 0 : i32
    %c0_i32_1 = arith.constant 0 : i32
    return %arg0, %c0_i32, %c0_i32_0 : i32, i32, i32
  }
}

</mosaic_0001>

<bundles_post_ra>
// kernel: tpu_custom_call.1
= control target key start
LH: loop header
LB: loop body
LE: loop exit
PB: predicated region body
PF: predicated region fallthrough
CT: control target
= control target key end

     0   :  { %s2876_s0 = inlined_call_operand.vmem [shape: f32[2,28,28], index: 0, kind: input, shape index: {}]   ;;  %s2877_s1 = inlined_call_operand.hbm [shape: f32[5,28,192], index: 1, kind: input, shape index: {}]   ;;  %s2878_s2 = inlined_call_operand.hbm [shape: f32[1,192], index: 2, kind: input, shape index: {}]   ;;  %s2879_s3 = inlined_call_operand.hbm [shape: f32[5,96,128], index: 3, kind: input, shape index: {}]   ;;  %s2880_s4 = inlined_call_operand.hbm [shape: f32[1,128], index: 4, kind: input, shape index: {}]   ;;  %s2881_s5 = inlined_call_operand.hbm [shape: f32[256,128], index: 5, kind: input, shape index: {}]   ;;  %s2882_s6 = inlined_call_operand.hbm [shape: f32[1,128], index: 6, kind: input, shape index: {}]   ;;  %s2883_s7 = inlined_call_operand.hbm [shape: f32[128,128], index: 7, kind: input, shape index: {}]   ;;  %s2884_s8 = inlined_call_operand.hbm [shape: f32[1,128], index: 8, kind: input, shape index: {}]   ;;  %s2885_s9 = inlined_call_operand.vmem [shape: f32[128,128], index: 9, kind: input, shape index: {}]   ;;  %s2886_s10 = inlined_call_operand.vmem [shape: f32[1,128], index: 10, kind: input, shape index: {}]   ;;  %s2887_s11 = inlined_call_operand.hbm [shape: f32[2,1,128], index: 11, kind: output, shape index: {}]  }
   0x1   :  { %2891 = sst [smem:[#allocation26_spill]] %s2877_s1 }
   0x2   :  { %2892 = sst [smem:[#allocation27_spill]] %s2878_s2 }
   0x3   :  { %2893 = sst [smem:[#allocation28_spill]] %s2879_s3 }
   0x4   :  { %2894 = sst [smem:[#allocation29_spill]] %s2880_s4 }
   0x5   :  { %16 = vsyncpa [#allocation3], 0 }
   0x6   :  { %17 = vsyncpa [#allocation6], 0 }
   0x7   :  { %18 = vsyncpa [#allocation9], 0 }
   0x8   :  { %19 = vsyncpa [#allocation12], 0 }
   0x9   :  { %20 = vsyncpa [#allocation15], 0 }
   0xa   :  { %21 = vsyncpa [#allocation4], 0 }
   0xb   :  { %23 = vsyncpa [#allocation4 + $0x1], 0  ;;  %s2436_s17 = smov 0   ;;  %s2438_s18 = smov 0  }
   0xc   :  { %s2440_s19 = smov 0   ;;  %s2442_s20 = smov 0  }
   0xd LB: > { %2895 = sst [smem:[#allocation23_spill]] %s2355_s19  ;;  %s2457_s21 = sadd.s32 4294967295, %s2359_s20   ;;  %s2359_s20 = sphi %s2442_s20, %s2906_s20   ;;  %s2355_s19 = sphi %s2440_s19, %s2908_s19   ;;  %s2351_s18 = sphi %s2438_s18, %s2910_s18   ;;  %s2347_s17 = sphi %s2436_s17, %s2909_s17  }
   0xe   : > { %s1791_s22 = sadd.s32 4294967294, %s2359_s20   ;;  %s2461_s23 = sadd.s32 1, %s2359_s20  }
   0xf   : > { %2896 = sst [smem:[#allocation24_spill]] %s2461_s23  ;;  %s272_s24 = sadd.s32 1, %s2355_s19 }
  0x10   : > { %s269_s25 = ssub.s32 %s2359_s20, %s2461_s23  ;;  %p282_p0 = scmp.ne.s32.totalorder %s2355_s19, %s2351_s18 }
  0x11   : > { %p270_p1 = scmp.eq.s32.totalorder %s269_s25, 0  ;;  %p283_p2 = scmp.eq.s32.totalorder %s2457_s21, 1 }
  0x12   : > { %p288_p3 = scmp.ne.s32.totalorder %s2351_s18, %s2347_s17  ;;  %p289_p4 = scmp.eq.s32.totalorder %s1791_s22, 1 }
  0x13   : > { %s2472_s26 = scalar_select %p270_p1, %s2355_s19, %s272_s24  }
  0x14   : > { %p2474_p5 = por %p283_p2, %p282_p0  ;;  %p2478_p6 = por %p289_p4, %p288_p3 }
  0x15   : > { %2897 = sst [smem:[#allocation25_spill]] %s2472_s26  ;;  %p1792_p7 = scmp.ge.s32.totalorder %s2359_s20, 1 }
  0x16   : > { %p296_p8 = scmp.lt.s32.totalorder %s2359_s20, 3  ;;  %p1944_p9 = scmp.eq.s32.totalorder %s2457_s21, 0 }
  0x17   : > { %s2901_s2 = sld [smem:[#allocation27_spill]]  ;;  %s2361_s14 = smov [#allocation5]  }
  0x18   : > { %p2485_p10 = pnand %p1792_p7, %p296_p8  ;;  %s324_s15 = sshll.u32 %s2361_s14, 4  ;;  %s325_s15 = int_to_ptr.vmem [resolvable:$true] %s324_s15 }
  0x19   : > { %s2902_s4 = sld [smem:[#allocation29_spill]]  ;;  %s2362_s26 = smov [#allocation8]  }
  0x1a   : > { %p1915_p11 = pneg %p2485_p10  ;;  %s350_s14 = sshll.u32 %s2362_s26, 4  ;;  %s351_s14 = int_to_ptr.vmem [resolvable:$true] %s350_s14 }
  0x1b   : > { %s2904_s1 = sld [smem:[#allocation26_spill]]  ;;  %s2363_s19 = smov [#allocation11]  }
  0x1c   : > { %p2499_p12 = pnand %p1944_p9, %p1915_p11  ;;  %s376_s23 = sshll.u32 %s2363_s19, 4  ;;  %s377_s23 = int_to_ptr.vmem [resolvable:$true] %s376_s23 }
  0x1d   : > { %s322_s13 = sshll.u32 %s2901_s2, 4  ;;  %s374_s2 = sshll.u32 %s2882_s6, 4  ;;  %s323_s13 = int_to_ptr.hbm [resolvable:$true] %s322_s13  ;;  %s375_s2 = int_to_ptr.hbm [resolvable:$true] %s374_s2 }
  0x1e   : > { %1921 = dma.hbm_to_vmem [thread:$0]  (!%p2499_p12), %s323_s13, 32, %s325_s15, [#allocation6]  }
  0x1f   : > { %s348_s24 = sshll.u32 %s2902_s4, 4  ;;  %s2364_s30 = smov [#allocation2]   ;;  %s349_s24 = int_to_ptr.hbm [resolvable:$true] %s348_s24 }
  0x20   : > { %1927 = dma.hbm_to_vmem [thread:$0]  (!%p2499_p12), %s349_s24, 16, %s351_s14, [#allocation9]  }
  0x21   : > { %s307_s4 = sshll.u32 %s2904_s1, 4  ;;  %s309_s26 = sshll.u32 %s2364_s30, 4  ;;  %s308_s4 = int_to_ptr.hbm [resolvable:$true] %s307_s4  ;;  %s310_s26 = int_to_ptr.vmem [resolvable:$true] %s309_s26 }
  0x22   : > { %1933 = dma.hbm_to_vmem [thread:$0]  (!%p2499_p12), %s375_s2, 16, %s377_s23, [#allocation12]  }
  0x23   : > { %s2365_s12 = smov 256   ;;  %s2366_s13 = smov 16  }
  0x24   : > { %1918 = dma.hbm_to_vmem [thread:$0]  (!%p2499_p12), %s308_s4, 5120, %s310_s26, [#allocation3], %s2365_s12, %s2365_s12, %s2366_s13  }
  0x25   : > { %s2905_s3 = sld [smem:[#allocation28_spill]]  ;;  %s2367_s16 = smov [#allocation7]  }
  0x26   : > { %s335_s19 = sshll.u32 %s2367_s16, 4  ;;  %s359_s2 = sshll.u32 %s2881_s5, 4  ;;  %s336_s19 = int_to_ptr.vmem [resolvable:$true] %s335_s19  ;;  %s360_s2 = int_to_ptr.hbm [resolvable:$true] %s359_s2 }
  0x27   : > { %s2368_s23 = smov 128   ;;  %s2369_s30 = smov 8  }
  0x28   : > { %s2370_s4 = smov [#allocation10]   ;;  %s385_s15 = sshll.u32 %s2883_s7, 4  ;;  %s386_s15 = int_to_ptr.hbm [resolvable:$true] %s385_s15 }
  0x29   : > { %s361_s26 = sshll.u32 %s2370_s4, 4  ;;  %s400_s16 = sshll.u32 %s2884_s8, 4  ;;  %s362_s26 = int_to_ptr.vmem [resolvable:$true] %s361_s26  ;;  %s401_s16 = int_to_ptr.hbm [resolvable:$true] %s400_s16 }
  0x2a   : > { %1930 = dma.hbm_to_vmem [thread:$0]  (!%p2499_p12), %s360_s2, 4096, %s362_s26, [#allocation9], %s2368_s23, %s2368_s23, %s2369_s30  }
  0x2b   : > { %s333_s14 = sshll.u32 %s2905_s3, 4  ;;  %s2371_s22 = smov [#allocation13]   ;;  %s334_s14 = int_to_ptr.hbm [resolvable:$true] %s333_s14 }
  0x2c   : > { %1924 = dma.hbm_to_vmem [thread:$0]  (!%p2499_p12), %s334_s14, 7680, %s336_s19, [#allocation6], %s2368_s23, %s2368_s23, %s2369_s30  }
  0x2d   : > { %s387_s3 = sshll.u32 %s2371_s22, 4  ;;  %s2372_s14 = smov [#allocation14]   ;;  %s388_s3 = int_to_ptr.vmem [resolvable:$true] %s387_s3 }
  0x2e   : > { %1936 = dma.hbm_to_vmem [thread:$0]  (!%p2499_p12), %s386_s15, 2048, %s388_s3, [#allocation12], %s2368_s23, %s2368_s23, %s2369_s30  }
  0x2f   : > { %s402_s19 = sshll.u32 %s2372_s14, 4  ;;  %429 = sbr.rel (%p2485_p10) target bundleno = 1248 (0x4e0), region = 64  ;;  %s403_s19 = int_to_ptr.vmem [resolvable:$true] %s402_s19 }
  0x30   : > { %1939 = dma.hbm_to_vmem [thread:$0]  (!%p2499_p12), %s401_s16, 16, %s403_s19, [#allocation15]  }
  0x34   : > { %2322 = dma.done.wait (%p1944_p9), [#allocation3], 5120  }
  0x35   : > { %2324 = vsyncadd (%p1944_p9), [#allocation3], 4294962176 }
  0x36   : > { %2326 = dma.done.wait (%p1944_p9), [#allocation6], 7712  }
  0x37   : > { %2328 = vsyncadd (%p1944_p9), [#allocation6], 4294959584 }
  0x38   : > { %2330 = dma.done.wait (%p1944_p9), [#allocation9], 4112  }
  0x39   : > { %2332 = vsyncadd (%p1944_p9), [#allocation9], 4294963184 }
  0x3a   : > { %2334 = dma.done.wait (%p1944_p9), [#allocation12], 2064  }
  0x3b   : > { %2336 = vsyncadd (%p1944_p9), [#allocation12], 4294965232 }
  0x3c   : > { %2338 = dma.done.wait (%p1944_p9), [#allocation15], 16  }
  0x3d   : > { %2340 = vsyncadd (%p1944_p9), [#allocation15], 4294967280  ;;  %p504_p13 = scmp.lt.s32.totalorder %s2457_s21, 1  ;;  %vm549_vm0 = vcmask 1043456   ;;  %v528_v0 = vld [vmem:[#allocation2 + $0x70] sm:$0xf]  ;;  %s1653_s12 = scalar_lea.hbm %s2887_s11, %s2457_s21 }
  0x3e   : > { %v529_v1 = vld [vmem:[#allocation2 + $0x78] sm:$0xf]  ;;  %v519_v2 = vld [vmem:[#allocation2 + $0x30] sm:$0xf]  ;;  %1813 = vmatpush.msk.msra.mxu0 %vm549_vm0, %v528_v0  ;;  %1877 = vmatpush.msk.msra.mxu3 %vm549_vm0, %v528_v0  ;;  %v526_v3 = vld [vmem:[#allocation2 + $0x60] sm:$0xff]  ;;  %vm534_vm1 = vcmask 1046528  }
  0x3f   : > { %s505_s3 = scalar_select %p504_p13, %s2457_s21, 1  ;;  %v527_v4 = vld [vmem:[#allocation2 + $0x68] sm:$0xff]  ;;  %v517_v5 = vld [vmem:[#allocation2 + $0x20] sm:$0xff]  ;;  %1817 = vmatpush.msk.msra.mxu1 %vm549_vm0, %v529_v1  ;;  %1821 = vmatpush.msk.msra.mxu2 %vm549_vm0, %v519_v2  ;;  %v524_v6 = vld [vmem:[#allocation2 + $0x50] sm:$0xff]  ;;  %vm542_vm2 = vcmask 228352   ;;  %vm681_vm3 = vcmask 1045504  }
  0x40   : > { %569 = vmatpush.msra.mxu0 %v526_v3  ;;  %1878 = vmatpush.msra.mxu3 %v526_v3  ;;  %v525_v7 = vld [vmem:[#allocation2 + $0x58] sm:$0xff]  ;;  %v515_v8 = vld [vmem:[#allocation2 + $0x10] sm:$0xff]  ;;  %v522_v9 = vld [vmem:[#allocation2 + $0x40] sm:$0xff]  ;;  %vm768_vm4 = vcmask 1044480   ;;  %vm977_vm5 = vcmask 1041408   ;;  %vm979_vm6 = vcmask 1043458  }
  0x41   : > { %s1876_s29 = sshll.u32 %s505_s3, 5  ;;  %595 = vmatpush.msra.mxu1 %v527_v4  ;;  %633 = vmatpush.msra.mxu2 %v517_v5  ;;  %v523_v13 = vld [vmem:[#allocation2 + $0x48] sm:$0xff]  ;;  %v513_v14 = vld [vmem:[#allocation2] sm:$0xff]  ;;  %v520_v20 = vld [vmem:[#allocation2 + $0x38] sm:$0xf]  ;;  %vm982_vm7 = vcmask 1045508  }
  0x42   : > { %s2566_s23 = scalar_lea.vmem %s2876_s0, %s1876_s29  ;;  %570 = vmatpush.msra.mxu0 %v524_v6  ;;  %1879 = vmatpush.msra.mxu3 %v524_v6  ;;  %v680_v21 = vld [vmem:[#allocation2 + $0xb8] sm:$0xf]  ;;  %v679_v23 = vld [vmem:[#allocation2 + $0xb0] sm:$0xf]  ;;  %v518_v25 = vld [vmem:[#allocation2 + $0x28] sm:$0xff]  ;;  %s2373_s30 = smov 32  }
  0x43   : > { %v2571_v10 = vld [vmem:[%s2566_s23] sm:$0xff]  ;;  %v2574_v11 = vld [vmem:[%s2566_s23 + $0x8] sm:$0xff]  ;;  %v2577_v12 = vld [vmem:[%s2566_s23 + $0x10] sm:$0xff]  ;;  %596 = vmatpush.msra.mxu1 %v525_v7  ;;  %634 = vmatpush.msra.mxu2 %v515_v8  ;;  %vm1109_vm8 = vcmask 261120   ;;  %vm1189_vm9 = vcmask 1042434   ;;  %vm1187_vm10 = vcmask 1041409  }
  0x44   : > { %v535_v15 = vrot.slane %v2571_v10, 1  ;;  %v536_v16 = vrot.slane %v2574_v11, 1  ;;  %v538_v17 = vrot.slane %v2577_v12, 1  ;;  %571 = vmatpush.msra.mxu0 %v522_v9  ;;  %1880 = vmatpush.msra.mxu3 %v522_v9  ;;  %v2585_v22 = vld [vmem:[%s2566_s23 + $0x18] sm:$0xf]  ;;  %v678_v26 = vld [vmem:[#allocation2 + $0xa8] sm:$0xff] }
  0x45   : > { %597 = vmatpush.msra.mxu1 %v523_v13  ;;  %635 = vmatpush.msra.mxu2 %v513_v14  ;;  %v766_v24 = vld [vmem:[#allocation2 + $0xf0] sm:$0xf]  ;;  %v540_v27 = vrot.slane %v2585_v22, 1  ;;  %v677_v28 = vld [vmem:[#allocation2 + $0xa0] sm:$0xff]  ;;  %v516_v30 = vld [vmem:[#allocation2 + $0x18] sm:$0xff]  ;;  %v682_v31 = vrot.slane %v2571_v10, 2 }
  0x46   : > { %v537_v18 = vsel %vm534_vm1, %v535_v15, %v536_v16  ;;  %v539_v19 = vsel %vm534_vm1, %v536_v16, %v538_v17  ;;  %1822 = vmatmul.msk.f32.vlgmr.msra.gmra.mxu2 %vm542_vm2, %v2571_v10  ;;  %1825 = vmatpush.msk.msrb.mxu3 %vm549_vm0, %v520_v20  ;;  %v764_v29 = vld [vmem:[#allocation2 + $0xe0] sm:$0xff]  ;;  %v683_v32 = vrot.slane %v2574_v11, 2  ;;  %v676_v33 = vld [vmem:[#allocation2 + $0x98] sm:$0xff]  ;;  %v675_v34 = vld [vmem:[#allocation2 + $0x90] sm:$0xff]  ;;  %v685_v45 = vrot.slane %v2577_v12, 2  ;;  %s2374_s4 = smov 64  }
  0x47   : > { %1814 = vmatmul.msk.f32.vlgmr.msra.gmra.mxu0 %vm542_vm2, %v537_v18  ;;  %1815 = vmatmul.msk.f32.vlgmr.msra.gmra.mxu3 %vm542_vm2, %v539_v19  ;;  %v762_v35 = vld [vmem:[#allocation2 + $0xd0] sm:$0xff]  ;;  %v541_v36 = vsel %vm534_vm1, %v538_v17, %v540_v27  ;;  %v674_v37 = vld [vmem:[#allocation2 + $0x88] sm:$0xff]  ;;  %v673_v38 = vld [vmem:[#allocation2 + $0x80] sm:$0xff]  ;;  %v687_v56 = vrot.slane %v2585_v22, 2  ;;  %v769_v57 = vrot.slane %v2571_v10, 3  ;;  %v770_v58 = vrot.slane %v2574_v11, 3 }
  0x48   : > { %1818 = vmatmul.msk.f32.vlgmr.msra.gmra.mxu1 %vm542_vm2, %v537_v18  ;;  %1829 = vmatpush.msk.msrb.mxu0 %vm549_vm0, %v679_v23  ;;  %v684_v39 = vsel %vm681_vm3, %v682_v31, %v683_v32  ;;  %v514_v40 = vld [vmem:[#allocation2 + $0x8] sm:$0xff]  ;;  %v760_v41 = vld [vmem:[#allocation2 + $0xc0] sm:$0xff]  ;;  %v767_v42 = vld [vmem:[#allocation2 + $0xf8] sm:$0xf]  ;;  %v686_v51 = vsel %vm681_vm3, %v683_v32, %v685_v45  ;;  %v772_v61 = vrot.slane %v2577_v12, 3  ;;  %v855_v62 = vrot.slane %v2571_v10, 4 }
  0x49   : > { %1833 = vmatpush.msk.msrb.mxu1 %vm549_vm0, %v680_v21  ;;  %1837 = vmatpush.msk.msrb.mxu2 %vm549_vm0, %v766_v24  ;;  %v854_v43 = vld [vmem:[#allocation2 + $0x138] sm:$0xf]  ;;  %v853_v44 = vld [vmem:[#allocation2 + $0x130] sm:$0xf]  ;;  %v765_v46 = vld [vmem:[#allocation2 + $0xe8] sm:$0xff]  ;;  %v688_v59 = vsel %vm681_vm3, %v685_v45, %v687_v56  ;;  %v771_v60 = vsel %vm768_vm4, %v769_v57, %v770_v58  ;;  %v856_v63 = vrot.slane %v2574_v11, 4 }
  0x4a   : > { %659 = vmatpush.msrb.mxu3 %v518_v25  ;;  %714 = vmatpush.msrb.mxu0 %v677_v28  ;;  %v852_v47 = vld [vmem:[#allocation2 + $0x128] sm:$0xff]  ;;  %v851_v48 = vld [vmem:[#allocation2 + $0x120] sm:$0xff]  ;;  %v850_v49 = vld [vmem:[#allocation2 + $0x118] sm:$0xff]  ;;  %v773_v0 = vsel %vm768_vm4, %v770_v58, %v772_v61  ;;  %v774_v2 = vrot.slane %v2585_v22, 3  ;;  %v858_v3 = vrot.slane %v2577_v12, 4  ;;  %v860_v6 = vrot.slane %v2585_v22, 4 }
  0x4b   : > { %740 = vmatpush.msrb.mxu1 %v678_v26  ;;  %801 = vmatpush.msrb.mxu2 %v764_v29  ;;  %v763_v50 = vld [vmem:[#allocation2 + $0xd8] sm:$0xff]  ;;  %v849_v52 = vld [vmem:[#allocation2 + $0x110] sm:$0xff]  ;;  %v761_v53 = vld [vmem:[#allocation2 + $0xc8] sm:$0xff]  ;;  %v857_v1 = vsel %vm549_vm0, %v855_v62, %v856_v63  ;;  %vm1191_vm11 = vcmask 1043459   ;;  %vm1193_vm12 = vcmask 1044484   ;;  %vm1195_vm13 = vcmask 1045509  }
  0x4c   : > { %660 = vmatpush.msrb.mxu3 %v516_v30  ;;  %715 = vmatpush.msrb.mxu0 %v675_v34  ;;  %v848_v54 = vld [vmem:[#allocation2 + $0x108] sm:$0xff]  ;;  %v847_v55 = vld [vmem:[#allocation2 + $0x100] sm:$0xff]  ;;  %v775_v4 = vsel %vm768_vm4, %v772_v61, %v774_v2  ;;  %v859_v5 = vsel %vm549_vm0, %v856_v63, %v858_v3  ;;  %v861_v7 = vsel %vm549_vm0, %v858_v3, %v860_v6  ;;  %vm1197_vm14 = vcmask 1046534   ;;  %s1657_s16 = sshll.u32 %s1653_s12, 4  ;;  %s2297_s29 = scalar_lea.hbm %s2887_s11, 2  ;;  %s1658_s16 = int_to_ptr.hbm [resolvable:$true] %s1657_s16 }
  0x4d   : > { %741 = vmatpush.msrb.mxu1 %v676_v33  ;;  %802 = vmatpush.msrb.mxu2 %v762_v35  ;;  %v932_v30 = vld [vmem:[#allocation5] sm:$0x3]  ;;  %vm1199_vm15 = vcmask 1047559   ;;  %vm1466_vm1 = vcmask 1047556   ;;  %s2291_s14 = sshra.s32 %s1658_s16, 4  ;;  %s2292_s14 = int_to_ptr.hbm [resolvable:$true] %s2291_s14 }
  0x4e   : > { %716 = vmatpush.msrb.mxu0 %v673_v38  ;;  %1823 = vmatmul.msk.f32.gmra.mxu2 %vm542_vm2, %v2574_v11  ;;  %v935_v45 = vperm.slane %v932_v30, 1  ;;  %s2293_s19 = scalar_lea.hbm %s2292_s14, 1  ;;  %p2298_p3 = scmp.lt.s32.totalorder %s2292_s14, %s2887_s11 }
  0x4f   : > { %1816 = vmatmul.msk.f32.gmra.mxu3 %vm542_vm2, %v541_v36  ;;  %742 = vmatpush.msrb.mxu1 %v674_v37  ;;  %p2294_p0 = scmp.ne.s32.totalorder %s2292_s14, %s2293_s19  ;;  %p2299_p4 = scmp.lt.s32.totalorder %s2297_s29, %s2293_s19 }
  0x50   : > { %1819 = vmatmul.msk.f32.gmra.mxu1 %vm542_vm2, %v539_v19  ;;  %1830 = vmatmul.msk.f32.vlgmr.msrb.gmra.mxu0 %vm542_vm2, %v684_v39 }
  0x51   : > { %661 = vmatpush.msrb.mxu3 %v514_v40  ;;  %803 = vmatpush.msrb.mxu2 %v760_v41  ;;  %p2295_p1 = pnand %p2294_p0, %p2474_p5  ;;  %p2300_p7 = por %p2299_p4, %p2298_p3 }
  0x52   : > { %1849 = vmatpush.msk.msra.mxu1 %vm549_vm0, %v854_v43  ;;  %1845 = vmatpush.msk.msra.mxu0 %vm549_vm0, %v853_v44 }
  0x53   : > { %1841 = vmatpush.msk.msra.mxu3 %vm549_vm0, %v767_v42  ;;  %vm1201_vm0 = vcmask 785408   ;;  %p2296_p2 = pneg %p2295_p1 }
  0x54   : > { %913 = vmatpush.msra.mxu1 %v852_v47  ;;  %887 = vmatpush.msra.mxu0 %v851_v48 }
  0x55   : > { %827 = vmatpush.msra.mxu3 %v765_v46  ;;  %p2301_p8 = pnand %p2300_p7, %p2296_p2 }
  0x56   : > { %914 = vmatpush.msra.mxu1 %v850_v49  ;;  %1824 = vmatmul.msk.f32.gmra.mxu2 %vm542_vm2, %v2577_v12 }
  0x57   : > { %1826 = vmatmul.msk.f32.vlgmr.msrb.gmra.mxu3 %vm542_vm2, %v2571_v10  ;;  %888 = vmatpush.msra.mxu0 %v849_v52 }
  0x58   : > { %1820 = vmatmul.msk.f32.gmra.mxu1 %vm542_vm2, %v541_v36  ;;  %828 = vmatpush.msra.mxu3 %v763_v50  ;;  %v934_v36 = vperm.slane %v932_v30, 0 }
  0x59   : > { %1831 = vmatmul.msk.f32.gmra.mxu0 %vm542_vm2, %v686_v51  ;;  %915 = vmatpush.msra.mxu1 %v848_v54 }
  0x5a   : > { %829 = vmatpush.msra.mxu3 %v761_v53  ;;  %889 = vmatpush.msra.mxu0 %v847_v55 }
  0x5e   : > { %1838 = vmatmul.msk.f32.vlgmr.msrb.gmra.mxu2 %vm542_vm2, %v771_v60 }
  0x5f   : > { %1827 = vmatmul.msk.f32.gmra.mxu3 %vm542_vm2, %v2574_v11 }
  0x60   : > { %1834 = vmatmul.msk.f32.vlgmr.msrb.gmra.mxu1 %vm542_vm2, %v684_v39 }
  0x61   : > { %1832 = vmatmul.msk.f32.gmra.mxu0 %vm542_vm2, %v688_v59 }
  0x66   : > { %1839 = vmatmul.msk.f32.gmra.mxu2 %vm542_vm2, %v773_v0 }
  0x67   : > { %1828 = vmatmul.msk.f32.gmra.mxu3 %vm542_vm2, %v2577_v12 }
  0x68   : > { %1835 = vmatmul.msk.f32.gmra.mxu1 %vm542_vm2, %v686_v51 }
  0x69   : > { %1846 = vmatmul.msk.f32.vlgmr.msra.gmra.mxu0 %vm542_vm2, %v857_v1 }
  0x6e   : > { %1840 = vmatmul.msk.f32.gmra.mxu2 %vm542_vm2, %v775_v4 }
  0x6f   : > { %1842 = vmatmul.msk.f32.vlgmr.msra.gmra.mxu3 %vm542_vm2, %v771_v60 }
  0x70   : > { %1836 = vmatmul.msk.f32.gmra.mxu1 %vm542_vm2, %v688_v59 }
  0x71   : > { %1847 = vmatmul.msk.f32.gmra.mxu0 %vm542_vm2, %v859_v5 }
  0x77   : > { %1843 = vmatmul.msk.f32.gmra.mxu3 %vm542_vm2, %v773_v0 }
  0x78   : > { %1850 = vmatmul.msk.f32.vlgmr.msra.gmra.mxu1 %vm542_vm2, %v857_v1 }
  0x79   : > { %1848 = vmatmul.msk.f32.gmra.mxu0 %vm542_vm2, %v861_v7 }
  0x7f   : > { %1844 = vmatmul.msk.f32.gmra.mxu3 %vm542_vm2, %v775_v4 }
  0x80   : > { %1851 = vmatmul.msk.f32.gmra.mxu1 %vm542_vm2, %v859_v5 }
  0x88   : > { %1852 = vmatmul.msk.f32.gmra.mxu1 %vm542_vm2, %v861_v7  ;;  %vm1485_vm2 = vcmask 523264  }
  0xc4   : > { %v573_v8 = vpop.f32.mrf.mxu0 }
  0xc5   : > { %v599_v9 = vpop.f32.mrf.mxu1 }
  0xc9   : > { %v637_v11 = vpop.f32.mrf.mxu2 }
  0xca   : > { %v576_v10 = vpop.f32.mrf.mxu3  ;;  %v638_v23 = vadd.f32 %v637_v11, %v573_v8 }
  0xcd   : > { %v602_v12 = vpop.f32.mrf.mxu1  ;;  %v718_v13 = vpop.f32.mrf.mxu0 }
  0xce   : > { %v753_v27 = vadd.f32 %v718_v13, %v638_v23 }
  0xd1   : > { %v640_v15 = vpop.f32.mrf.mxu2 }
  0xd2   : > { %v579_v14 = vpop.f32.mrf.mxu3  ;;  %v641_v31 = vadd.f32 %v640_v15, %v576_v10 }
  0xd5   : > { %v605_v16 = vpop.f32.mrf.mxu1 }
  0xd6   : > { %v721_v17 = vpop.f32.mrf.mxu0 }
  0xd7   : > { %v755_v37 = vadd.f32 %v721_v17, %v641_v31 }
  0xd9   : > { %v643_v19 = vpop.f32.mrf.mxu2 }
  0xda   : > { %v663_v18 = vpop.f32.mrf.mxu3  ;;  %v644_v44 = vadd.f32 %v643_v19, %v579_v14 }
  0xdb   : > { %v664_v32 = vadd.f32 %v663_v18, %v599_v9 }
  0xdd   : > { %v744_v20 = vpop.f32.mrf.mxu1 }
  0xde   : > { %v724_v21 = vpop.f32.mrf.mxu0  ;;  %v754_v38 = vadd.f32 %v744_v20, %v664_v32 }
  0xdf   : > { %v757_v52 = vadd.f32 %v724_v21, %v644_v44 }
  0xe1   : > { %v805_v24 = vpop.f32.mrf.mxu2 }
  0xe2   : > { %v666_v22 = vpop.f32.mrf.mxu3  ;;  %v840_v28 = vadd.f32 %v805_v24, %v753_v27 }
  0xe3   : > { %v667_v46 = vadd.f32 %v666_v22, %v602_v12 }
  0xe5   : > { %v747_v25 = vpop.f32.mrf.mxu1 }
  0xe6   : > { %v891_v26 = vpop.f32.mrf.mxu0  ;;  %v756_v54 = vadd.f32 %v747_v25, %v667_v46 }
  0xe7   : > { %v926_v35 = vadd.f32 %v891_v26, %v840_v28 }
  0xe9   : > { %v808_v33 = vpop.f32.mrf.mxu2  ;;  %v938_v40 = vadd.f32 %v934_v36, %v926_v35 }
  0xea   : > { %v669_v29 = vpop.f32.mrf.mxu3  ;;  %v842_v41 = vadd.f32 %v808_v33, %v755_v37 }
  0xeb   : > { %v944_v48 = vmul.f32 0.5, %v938_v40  ;;  %v670_v61 = vadd.f32 %v669_v29, %v605_v16 }
  0xed   : > { %v750_v34 = vpop.f32.mrf.mxu1  ;;  %2019 = vtanh.f32 %v944_v48 }
  0xee   : > { %v894_v39 = vpop.f32.mrf.mxu0  ;;  %v758_v4 = vadd.f32 %v750_v34, %v670_v61 }
  0xef   : > { %v928_v49 = vadd.f32 %v894_v39, %v842_v41 }
  0xf1   : > { %v811_v51 = vpop.f32.mrf.mxu2  ;;  %v940_v55 = vadd.f32 %v934_v36, %v928_v49 }
  0xf2   : > { %v831_v42 = vpop.f32.mrf.mxu3  ;;  %v844_v56 = vadd.f32 %v811_v51, %v757_v52 }
  0xf3   : > { %v841_v43 = vadd.f32 %v831_v42, %v754_v38  ;;  %v946_v63 = vmul.f32 0.5, %v940_v55  ;;  %v2020_v2 = vpop.eup %2019 }
  0xf4   : > { %v956_v9 = vmul.f32 0.5, %v2020_v2 }
  0xf5   : > { %v917_v47 = vpop.f32.mrf.mxu1 }
  0xf6   : > { %v927_v50 = vadd.f32 %v917_v47, %v841_v43  ;;  %v897_v59 = vpop.f32.mrf.mxu0  ;;  %v962_v16 = vadd.f32 0.5, %v956_v9 }
  0xf7   : > { %v930_v0 = vadd.f32 %v897_v59, %v844_v56 }
  0xf8   : > { %v939_v53 = vadd.f32 %v935_v45, %v927_v50 }
  0xf9   : > { %v942_v6 = vadd.f32 %v934_v36, %v930_v0 }
  0xfa   : > { %v945_v57 = vmul.f32 0.5, %v939_v53  ;;  %v834_v58 = vpop.f32.mrf.mxu3 }
  0xfb   : > { %v843_v60 = vadd.f32 %v834_v58, %v756_v54  ;;  %v948_v14 = vmul.f32 0.5, %v942_v6 }
  0xfc   : > { %2021 = vtanh.f32 %v945_v57 }
  0xfd   : > { %v920_v62 = vpop.f32.mrf.mxu1  ;;  %2023 = vtanh.f32 %v946_v63 }
  0xfe   : > { %v929_v1 = vadd.f32 %v920_v62, %v843_v60 }
 0x100   : > { %v941_v3 = vadd.f32 %v935_v45, %v929_v1 }
 0x102   : > { %v2022_v5 = vpop.eup %2021  ;;  %v947_v7 = vmul.f32 0.5, %v941_v3  ;;  %v837_v8 = vpop.f32.mrf.mxu3 }
 0x103   : > { %v957_v10 = vmul.f32 0.5, %v2022_v5  ;;  %v845_v11 = vadd.f32 %v837_v8, %v758_v4  ;;  %v2024_v18 = vpop.eup %2023 }
 0x104   : > { %2025 = vtanh.f32 %v947_v7  ;;  %v958_v27 = vmul.f32 0.5, %v2024_v18  ;;  %v1167_v18 = vld [vmem:[#allocation7 + $0xa0] sm:$0xff] }
 0x105   : > { %v963_v12 = vadd.f32 0.5, %v957_v10  ;;  %v923_v13 = vpop.f32.mrf.mxu1  ;;  %2027 = vtanh.f32 %v948_v14 }
 0x106   : > { %v931_v15 = vadd.f32 %v923_v13, %v845_v11  ;;  %v964_v36 = vadd.f32 0.5, %v958_v27  ;;  %v1155_v27 = vld [vmem:[#allocation7 + $0x48] sm:$0xff] }
 0x107   : > { %v974_v17 = vrot.slane %v963_v12, 6 }
 0x108   : > { %v943_v19 = vadd.f32 %v935_v45, %v931_v15  ;;  %v1170_v15 = vld [vmem:[#allocation7 + $0xb8] sm:$0xff] }
 0x109   : > { %v978_v20 = vsel %vm977_vm5, %v962_v16, %v974_v17  ;;  %v980_v21 = vsel %vm979_vm6, %v962_v16, %v974_v17  ;;  %v985_v22 = vsel %vm681_vm3, %v974_v17, %v962_v16  ;;  %v983_v29 = vsel %vm982_vm7, %v962_v16, %v974_v17  ;;  %1208 = vmatpush.msra.mxu2 %v1170_v15  ;;  %v1169_v16 = vld [vmem:[#allocation7 + $0xb0] sm:$0xff]  ;;  %v1168_v17 = vld [vmem:[#allocation7 + $0xa8] sm:$0xff]  ;;  %v1304_v15 = vld [vmem:[#allocation7 + $0x138] sm:$0xff] }
 0x10a   : > { %v2026_v23 = vpop.eup %2025  ;;  %v949_v24 = vmul.f32 0.5, %v943_v19  ;;  %v1853_v25 = vrot.slane %v978_v20, 9  ;;  %v981_v26 = vrot.slane %v980_v21, 2  ;;  %v986_v32 = vrot.slane %v985_v22, 6  ;;  %v1166_v19 = vld [vmem:[#allocation7 + $0x98] sm:$0xff]  ;;  %v1164_v21 = vld [vmem:[#allocation7 + $0x88] sm:$0xff] }
 0x10b   : > { %v959_v28 = vmul.f32 0.5, %v2026_v23  ;;  %v984_v35 = vrot.slane %v983_v29, 4  ;;  %v2028_v38 = vpop.eup %2027  ;;  %1209 = vmatpush.msra.mxu2 %v1169_v16  ;;  %v1163_v22 = vld [vmem:[#allocation7 + $0x80] sm:$0xff]  ;;  %v1157_v23 = vld [vmem:[#allocation7 + $0x58] sm:$0xff] }
 0x10c   : > { %2029 = vtanh.f32 %v949_v24  ;;  %v2657_v30 = vmax.f32 %v978_v20, %v1853_v25  ;;  %v1854_v31 = vrot.slane %v981_v26, 9  ;;  %v1856_v39 = vrot.slane %v986_v32, 9  ;;  %v1165_v20 = vld [vmem:[#allocation7 + $0x90] sm:$0xff]  ;;  %1239 = vmatpush.msrb.mxu3 %v1157_v23  ;;  %v1162_v24 = vld [vmem:[#allocation7 + $0x78] sm:$0xff]  ;;  %v1154_v29 = vld [vmem:[#allocation7 + $0x40] sm:$0xff] }
 0x10d   : > { %v965_v33 = vadd.f32 0.5, %v959_v28  ;;  %v1855_v45 = vrot.slane %v984_v35, 9  ;;  %v960_v46 = vmul.f32 0.5, %v2028_v38  ;;  %1210 = vmatpush.msra.mxu2 %v1168_v17  ;;  %v1156_v25 = vld [vmem:[#allocation7 + $0x50] sm:$0xff]  ;;  %v1160_v28 = vld [vmem:[#allocation7 + $0x68] sm:$0xff] }
 0x10e   : > { %1073 = vrot.lane.b32.xlu1 %v2657_v30, %s2373_s30  ;;  %v2661_v34 = vmax.f32 %v981_v26, %v1854_v31  ;;  %v2671_v50 = vmax.f32 %v986_v32, %v1856_v39  ;;  %1240 = vmatpush.msrb.mxu3 %v1156_v25  ;;  %v1161_v26 = vld [vmem:[#allocation7 + $0x70] sm:$0xff]  ;;  %v1267_v31 = vld [vmem:[#allocation7 + $0x118] sm:$0xff]  ;;  %v1159_v32 = vld [vmem:[#allocation7 + $0x60] sm:$0xff] }
 0x10f   : > { %v975_v37 = vrot.slane %v965_v33, 6  ;;  %v2677_v54 = vmax.f32 %v984_v35, %v1855_v45  ;;  %v966_v56 = vadd.f32 0.5, %v960_v46  ;;  %1211 = vmatpush.msra.mxu2 %v1167_v18  ;;  %1283 = vmatpush.msrb.mxu0 %v1267_v31  ;;  %v1153_v33 = vld [vmem:[#allocation7 + $0x38] sm:$0xff]  ;;  %v1152_v38 = vld [vmem:[#allocation7 + $0x30] sm:$0xff]  ;;  %v1355_v45 = vld [vmem:[#allocation7 + $0x1c8] sm:$0xff] }
 0x110   : > { %1075 = vrot.lane.b32.xlu0 %v2661_v34, %s2373_s30  ;;  %1241 = vmatpush.msrb.mxu3 %v1155_v27  ;;  %v1312_v35 = vld [vmem:[#allocation7 + $0x178] sm:$0xff]  ;;  %v1311_v39 = vld [vmem:[#allocation7 + $0x170] sm:$0xff]  ;;  %v1302_v23 = vld [vmem:[#allocation7 + $0x128] sm:$0xff] }
 0x111   : > { %v987_v40 = vsel %vm977_vm5, %v964_v36, %v975_v37  ;;  %v988_v41 = vsel %vm979_vm6, %v964_v36, %v975_v37  ;;  %v992_v42 = vsel %vm681_vm3, %v975_v37, %v964_v36  ;;  %v990_v48 = vsel %vm982_vm7, %v964_v36, %v975_v37  ;;  %1212 = vmatpush.msra.mxu2 %v1166_v19  ;;  %v1266_v36 = vld [vmem:[#allocation7 + $0x110] sm:$0xff]  ;;  %v1357_v37 = vld [vmem:[#allocation7 + $0x1d8] sm:$0xff]  ;;  %v1256_v25 = vld [vmem:[#allocation7 + $0xc0] sm:$0xff] }
 0x112   : > { %v2030_v43 = vpop.eup %2029  ;;  %v1857_v44 = vrot.slane %v987_v40, 9  ;;  %v989_v51 = vrot.slane %v988_v41, 2  ;;  %v993_v52 = vrot.slane %v992_v42, 6  ;;  %v991_v55 = vrot.slane %v990_v48, 4  ;;  %1242 = vmatpush.msrb.mxu3 %v1154_v29  ;;  %1328 = vmatpush.msrb.mxu1 %v1312_v35  ;;  %v1356_v41 = vld [vmem:[#allocation7 + $0x1d0] sm:$0xff]  ;;  %v1151_v42 = vld [vmem:[#allocation7 + $0x28] sm:$0xff] }
 0x113   : > { %v961_v47 = vmul.f32 0.5, %v2030_v43  ;;  %1213 = vmatpush.msra.mxu2 %v1165_v20  ;;  %1284 = vmatpush.msrb.mxu0 %v1266_v36  ;;  %v1310_v43 = vld [vmem:[#allocation7 + $0x168] sm:$0xff]  ;;  %v1309_v48 = vld [vmem:[#allocation7 + $0x160] sm:$0xff]  ;;  %v1258_v17 = vld [vmem:[#allocation7 + $0xd0] sm:$0xff] }
 0x114   : > { %v2669_v49 = vmax.f32 %v987_v40, %v1857_v44  ;;  %v1858_v58 = vrot.slane %v989_v51, 9  ;;  %v1860_v59 = vrot.slane %v993_v52, 9  ;;  %v1859_v61 = vrot.slane %v991_v55, 9  ;;  %1243 = vmatpush.msrb.mxu3 %v1153_v33  ;;  %v1265_v40 = vld [vmem:[#allocation7 + $0x108] sm:$0xff]  ;;  %1329 = vmatpush.msrb.mxu1 %v1311_v39  ;;  %v1264_v44 = vld [vmem:[#allocation7 + $0x100] sm:$0xff]  ;;  %v1349_v18 = vld [vmem:[#allocation7 + $0x198] sm:$0xff] }
 0x115   : > { %v967_v53 = vadd.f32 0.5, %v961_v47  ;;  %1214 = vmatpush.msra.mxu2 %v1164_v21  ;;  %1285 = vmatpush.msrb.mxu0 %v1265_v40  ;;  %v1150_v47 = vld [vmem:[#allocation7 + $0x20] sm:$0xff]  ;;  %v1303_v19 = vld [vmem:[#allocation7 + $0x130] sm:$0xff]  ;;  %v1257_v21 = vld [vmem:[#allocation7 + $0xc8] sm:$0xff] }
 0x116   : > { %1081 = vrot.lane.b32.xlu2 %v2669_v49, %s2373_s30  ;;  %1079 = vrot.lane.b32.xlu1 %v2671_v50, %s2373_s30  ;;  %v2683_v63 = vmax.f32 %v989_v51, %v1858_v58  ;;  %v2685_v0 = vmax.f32 %v993_v52, %v1860_v59  ;;  %v2692_v3 = vmax.f32 %v991_v55, %v1859_v61  ;;  %v1263_v51 = vld [vmem:[#allocation7 + $0xf8] sm:$0xff]  ;;  %v1354_v52 = vld [vmem:[#allocation7 + $0x1c0] sm:$0xff]  ;;  %v1148_v58 = vld [vmem:[#allocation7 + $0x10] sm:$0xff] }
 0x117   : > { %v976_v57 = vrot.slane %v967_v53, 6  ;;  %1215 = vmatpush.msra.mxu2 %v1163_v22  ;;  %1244 = vmatpush.msrb.mxu3 %v1152_v38  ;;  %v1149_v53 = vld [vmem:[#allocation7 + $0x18] sm:$0xff]  ;;  %v1307_v59 = vld [vmem:[#allocation7 + $0x150] sm:$0xff]  ;;  %v1301_v27 = vld [vmem:[#allocation7 + $0x120] sm:$0xff] }
 0x118   : > { %1077 = vrot.lane.b32.xlu0 %v2677_v54, %s2373_s30  ;;  %1330 = vmatpush.msrb.mxu1 %v1310_v43  ;;  %v1308_v55 = vld [vmem:[#allocation7 + $0x158] sm:$0xff]  ;;  %v1352_v61 = vld [vmem:[#allocation7 + $0x1b0] sm:$0xff]  ;;  %v1346_v29 = vld [vmem:[#allocation7 + $0x180] sm:$0xff] }
 0x119   : > { %v997_v60 = vsel %vm982_vm7, %v966_v56, %v976_v57  ;;  %v995_v62 = vsel %vm979_vm6, %v966_v56, %v976_v57  ;;  %v994_v2 = vsel %vm977_vm5, %v966_v56, %v976_v57  ;;  %v999_v7 = vsel %vm681_vm3, %v976_v57, %v966_v56  ;;  %1216 = vmatpush.msra.mxu2 %v1162_v24  ;;  %v1262_v56 = vld [vmem:[#allocation7 + $0xf0] sm:$0xff]  ;;  %v1353_v57 = vld [vmem:[#allocation7 + $0x1b8] sm:$0xff] }
 0x11a   : > { %v998_v1 = vrot.slane %v997_v60, 4  ;;  %v996_v4 = vrot.slane %v995_v62, 2  ;;  %v1861_v5 = vrot.slane %v994_v2, 9  ;;  %v1000_v11 = vrot.slane %v999_v7, 6  ;;  %1245 = vmatpush.msrb.mxu3 %v1151_v42  ;;  %1286 = vmatpush.msrb.mxu0 %v1264_v44  ;;  %v1261_v60 = vld [vmem:[#allocation7 + $0xe8] sm:$0xff]  ;;  %v1259_v7 = vld [vmem:[#allocation7 + $0xd8] sm:$0xff] }
 0x11b   : > { %1217 = vmatpush.msra.mxu2 %v1161_v26  ;;  %1331 = vmatpush.msrb.mxu1 %v1309_v48  ;;  %v1147_v62 = vld [vmem:[#allocation7 + $0x8] sm:$0xff]  ;;  %v1348_v22 = vld [vmem:[#allocation7 + $0x190] sm:$0xff] }
 0x11c   : > { %v1863_v6 = vrot.slane %v998_v1, 9  ;;  %v1862_v8 = vrot.slane %v996_v4, 9  ;;  %v2697_v9 = vmax.f32 %v994_v2, %v1861_v5  ;;  %v1864_v13 = vrot.slane %v1000_v11, 9  ;;  %1246 = vmatpush.msrb.mxu3 %v1150_v47  ;;  %1287 = vmatpush.msrb.mxu0 %v1263_v51  ;;  %v1260_v2 = vld [vmem:[#allocation7 + $0xe0] sm:$0xff]  ;;  %v1347_v26 = vld [vmem:[#allocation7 + $0x188] sm:$0xff] }
 0x11d   : > { %1218 = vmatpush.msra.mxu2 %v1160_v28  ;;  %1332 = vmatpush.msrb.mxu1 %v1308_v55  ;;  %v1146_v5 = vld [vmem:[#allocation7] sm:$0xff] }
 0x11e   : > { %1083 = vrot.lane.b32.xlu2 %v2683_v63, %s2373_s30  ;;  %1087 = vrot.lane.b32.xlu1 %v2685_v0, %s2373_s30  ;;  %v2699_v10 = vmax.f32 %v998_v1, %v1863_v6  ;;  %v2705_v12 = vmax.f32 %v996_v4, %v1862_v8  ;;  %v2709_v14 = vmax.f32 %v1000_v11, %v1864_v13  ;;  %v1306_v1 = vld [vmem:[#allocation7 + $0x148] sm:$0xff]  ;;  %v1305_v6 = vld [vmem:[#allocation7 + $0x140] sm:$0xff] }
 0x11f   : > { %1219 = vmatpush.msra.mxu2 %v1159_v32  ;;  %1247 = vmatpush.msrb.mxu3 %v1149_v53  ;;  %v1351_v4 = vld [vmem:[#allocation7 + $0x1a8] sm:$0xff]  ;;  %v1350_v8 = vld [vmem:[#allocation7 + $0x1a0] sm:$0xff] }
 0x120   : > { %1085 = vrot.lane.b32.xlu0 %v2692_v3, %s2373_s30  ;;  %1288 = vmatpush.msrb.mxu0 %v1262_v56 }
 0x121   : > { %1373 = vmatpush.msrb.mxu2 %v1357_v37  ;;  %1248 = vmatpush.msrb.mxu3 %v1148_v58 }
 0x122   : > { %1333 = vmatpush.msrb.mxu1 %v1307_v59  ;;  %1289 = vmatpush.msrb.mxu0 %v1261_v60 }
 0x123   : > { %1374 = vmatpush.msrb.mxu2 %v1356_v41  ;;  %1249 = vmatpush.msrb.mxu3 %v1147_v62 }
 0x124   : > { %1334 = vmatpush.msrb.mxu1 %v1306_v1  ;;  %1290 = vmatpush.msrb.mxu0 %v1260_v2 }
 0x125   : > { %1375 = vmatpush.msrb.mxu2 %v1355_v45  ;;  %1250 = vmatpush.msrb.mxu3 %v1146_v5 }
 0x126   : > { %1089 = vrot.lane.b32.xlu2 %v2697_v9, %s2373_s30  ;;  %1093 = vrot.lane.b32.xlu1 %v2699_v10, %s2373_s30 }
 0x127   : > { %1376 = vmatpush.msrb.mxu2 %v1354_v52  ;;  %1335 = vmatpush.msrb.mxu1 %v1305_v6 }
 0x128   : > { %1091 = vrot.lane.b32.xlu0 %v2705_v12, %s2373_s30  ;;  %1291 = vmatpush.msrb.mxu0 %v1259_v7 }
 0x129   : > { %1377 = vmatpush.msrb.mxu2 %v1353_v57  ;;  %1336 = vmatpush.msrb.mxu1 %v1304_v15 }
 0x12a   : > { %1292 = vmatpush.msrb.mxu0 %v1258_v17 }
 0x12b   : > { %1378 = vmatpush.msrb.mxu2 %v1352_v61  ;;  %1337 = vmatpush.msrb.mxu1 %v1303_v19 }
 0x12c   : > { %1293 = vmatpush.msrb.mxu0 %v1257_v21 }
 0x12d   : > { %1379 = vmatpush.msrb.mxu2 %v1351_v4  ;;  %1338 = vmatpush.msrb.mxu1 %v1302_v23 }
 0x12e   : > { %1095 = vrot.lane.b32.xlu2 %v2709_v14, %s2373_s30  ;;  %1294 = vmatpush.msrb.mxu0 %v1256_v25  ;;  %s502_s30 = sand.u32 1, %s2351_s18  }
 0x12f   : > { %1380 = vmatpush.msrb.mxu2 %v1350_v8  ;;  %1339 = vmatpush.msrb.mxu1 %v1301_v27  ;;  %s503_s24 = scalar_lea.vmem [#allocation16], %s502_s30  ;;  %s1645_s22 = scalar_lea.sflag [#allocation4], %s502_s30 }
 0x130   : > { %s1655_s1 = sshll.u32 %s503_s24, 4  ;;  %s1656_s1 = int_to_ptr.vmem [resolvable:$true] %s1655_s1 }
 0x131   : > { %1381 = vmatpush.msrb.mxu2 %v1349_v18 }
 0x133   : > { %1382 = vmatpush.msrb.mxu2 %v1348_v22 }
 0x135   : > { %1383 = vmatpush.msrb.mxu2 %v1347_v26 }
 0x137   : > { %1384 = vmatpush.msrb.mxu2 %v1346_v29 }
 0x170   : > { %v2713_v46 = vpop.permute.xlu2 %1081 }
 0x171   : > { %v1101_v35 = vrot.slane %v2713_v46, 2 }
 0x173   : > { %v1114_v43 = vsel %vm1109_vm8, %v2713_v46, %v1101_v35 }
 0x174   : > { %v1138_v52 = vmax.f32 %v2669_v49, %v1114_v43 }
 0x178   : > { %v1084_v11 = vpop.permute.xlu2 %1083 }
 0x179   : > { %v1102_v38 = vrot.slane %v1084_v11, 2 }
 0x17b   : > { %v1115_v47 = vsel %vm1109_vm8, %v1084_v11, %v1102_v38 }
 0x17c   : > { %v1139_v55 = vmax.f32 %v2683_v63, %v1115_v47 }
 0x17e   : > { %v1183_v62 = vperm.slane %v1139_v55, 0 }
 0x180   : > { %v1074_v13 = vpop.permute.xlu1 %1073  ;;  %v1090_v31 = vpop.permute.xlu2 %1089 }
 0x181   : > { %v1097_v24 = vrot.slane %v1074_v13, 2  ;;  %v1105_v57 = vrot.slane %v1090_v31, 2 }
 0x182   : > { %v1076_v16 = vpop.permute.xlu0 %1075 }
 0x183   : > { %v1098_v20 = vrot.slane %v1076_v16, 2  ;;  %v1110_v32 = vsel %vm1109_vm8, %v1074_v13, %v1097_v24  ;;  %v1118_v4 = vsel %vm1109_vm8, %v1090_v31, %v1105_v57 }
 0x184   : > { %v1134_v40 = vmax.f32 %v2657_v30, %v1110_v32  ;;  %v1142_v18 = vmax.f32 %v2697_v9, %v1118_v4 }
 0x185   : > { %v1111_v28 = vsel %vm1109_vm8, %v1076_v16, %v1098_v20 }
 0x186   : > { %v1135_v36 = vmax.f32 %v2661_v34, %v1111_v28  ;;  %v1225_v51 = vperm.slane %v1134_v40, 0 }
 0x188   : > { %v1080_v33 = vpop.permute.xlu1 %1079  ;;  %v1179_v44 = vperm.slane %v1135_v36, 0  ;;  %v1096_v58 = vpop.permute.xlu2 %1095 }
 0x189   : > { %v1100_v37 = vrot.slane %v1080_v33, 2  ;;  %v1108_v1 = vrot.slane %v1096_v58, 2 }
 0x18a   : > { %v1078_v39 = vpop.permute.xlu0 %1077  ;;  %v1226_v46 = vsel %vm1187_vm10, %v1179_v44, %v1225_v51 }
 0x18b   : > { %v1113_v41 = vsel %vm1109_vm8, %v1080_v33, %v1100_v37  ;;  %v1099_v42 = vrot.slane %v1078_v39, 2  ;;  %v1121_v19 = vsel %vm1109_vm8, %v1096_v58, %v1108_v1 }
 0x18c   : > { %v1137_v48 = vmax.f32 %v2671_v50, %v1113_v41  ;;  %v1145_v40 = vmax.f32 %v2709_v14, %v1121_v19 }
 0x18d   : > { %v1112_v45 = vsel %vm1109_vm8, %v1078_v39, %v1099_v42  ;;  %v1186_v39 = vperm.slane %v1142_v18, 0 }
 0x18e   : > { %v1136_v34 = vmax.f32 %v2677_v54, %v1112_v45  ;;  %v1181_v59 = vperm.slane %v1137_v48, 0  ;;  %v1182_v54 = vperm.slane %v1138_v52, 0 }
 0x190   : > { %v1180_v30 = vperm.slane %v1136_v34, 0  ;;  %v1088_v53 = vpop.permute.xlu1 %1087  ;;  %v1315_v5 = vsel %vm1187_vm10, %v1182_v54, %v1181_v59  ;;  %v1360_v17 = vsel %vm1187_vm10, %v1183_v62, %v1182_v54 }
 0x191   : > { %v1104_v56 = vrot.slane %v1088_v53, 2  ;;  %v1316_v21 = vsel %vm1189_vm9, %v1183_v62, %v1315_v5 }
 0x192   : > { %v1227_v50 = vsel %vm1189_vm9, %v1180_v30, %v1226_v46  ;;  %v1086_v60 = vpop.permute.xlu0 %1085  ;;  %v1188_v61 = vsel %vm1187_vm10, %v1180_v30, %v1179_v44  ;;  %v1270_v7 = vsel %vm1187_vm10, %v1181_v59, %v1180_v30  ;;  %v1359_v46 = vperm.slane %v1145_v40, 0  ;;  %v1494_v40 = vld [vmem:[#allocation10 + $0x30] sm:$0xff] }
 0x193   : > { %v1117_v49 = vsel %vm1109_vm8, %v1088_v53, %v1104_v56  ;;  %v1228_v63 = vsel %vm1191_vm11, %v1181_v59, %v1227_v50  ;;  %v1103_v2 = vrot.slane %v1086_v60, 2  ;;  %v1190_v6 = vsel %vm1189_vm9, %v1181_v59, %v1188_v61 }
 0x194   : > { %v1141_v8 = vmax.f32 %v2685_v0, %v1117_v49  ;;  %v1229_v13 = vsel %vm1193_vm12, %v1182_v54, %v1228_v63  ;;  %v1192_v0 = vsel %vm1191_vm11, %v1182_v54, %v1190_v6  ;;  %v1271_v22 = vsel %vm1189_vm9, %v1182_v54, %v1270_v7  ;;  %v2018_v49 = vld [vmem:[#allocation8] ss:$0 sm:$0xff] }
 0x195   : > { %v1116_v11 = vsel %vm1109_vm8, %v1086_v60, %v1103_v2  ;;  %v1230_v27 = vsel %vm1195_vm13, %v1183_v62, %v1229_v13  ;;  %v1272_v32 = vsel %vm1191_vm11, %v1183_v62, %v1271_v22 }
 0x196   : > { %v1140_v15 = vmax.f32 %v2692_v3, %v1116_v11  ;;  %v1185_v25 = vperm.slane %v1141_v8, 0 }
 0x198   : > { %v1094_v16 = vpop.permute.xlu1 %1093  ;;  %v1184_v23 = vperm.slane %v1140_v15, 0 }
 0x199   : > { %v1107_v20 = vrot.slane %v1094_v16, 2 }
 0x19a   : > { %v1092_v24 = vpop.permute.xlu0 %1091  ;;  %v1361_v9 = vsel %vm1189_vm9, %v1184_v23, %v1360_v17  ;;  %v1317_v29 = vsel %vm1191_vm11, %v1184_v23, %v1316_v21  ;;  %v1231_v31 = vsel %vm1197_vm14, %v1184_v23, %v1230_v27  ;;  %v1273_v42 = vsel %vm1193_vm12, %v1184_v23, %v1272_v32  ;;  %v1518_v27 = vld [vmem:[#allocation10 + $0xf0] sm:$0xff]  ;;  %v1496_v32 = vld [vmem:[#allocation10 + $0x40] sm:$0xff] }
 0x19b   : > { %v1120_v3 = vsel %vm1109_vm8, %v1094_v16, %v1107_v20  ;;  %v1106_v26 = vrot.slane %v1092_v24, 2  ;;  %v1232_v35 = vsel %vm1199_vm15, %v1185_v25, %v1231_v31  ;;  %v1318_v37 = vsel %vm1193_vm12, %v1185_v25, %v1317_v29  ;;  %v1498_v29 = vld [vmem:[#allocation10 + $0x50] sm:$0xff]  ;;  %v1497_v31 = vld [vmem:[#allocation10 + $0x48] sm:$0xff] }
 0x19c   : > { %v1144_v28 = vmax.f32 %v2699_v10, %v1120_v3  ;;  %v1362_v38 = vsel %vm1191_vm11, %v1185_v25, %v1361_v9  ;;  %1866 = vmatmul.msk.f32.vlgmr.msrb.gmra.mxu3 %vm1201_vm0, %v1232_v35  ;;  %v1194_v10 = vsel %vm1193_vm12, %v1183_v62, %v1192_v0  ;;  %v1319_v47 = vsel %vm1195_vm13, %v1186_v39, %v1318_v37  ;;  %v1500_v3 = vld [vmem:[#allocation10 + $0x60] sm:$0xff]  ;;  %v1517_v9 = vld [vmem:[#allocation10 + $0xe8] sm:$0xff] }
 0x19d   : > { %v1119_v33 = vsel %vm1109_vm8, %v1092_v24, %v1106_v26  ;;  %v1196_v41 = vsel %vm1195_vm13, %v1184_v23, %v1194_v10  ;;  %v1363_v48 = vsel %vm1193_vm12, %v1186_v39, %v1362_v38  ;;  %v1503_v23 = vld [vmem:[#allocation10 + $0x78] sm:$0xff]  ;;  %v1502_v24 = vld [vmem:[#allocation10 + $0x70] sm:$0xff] }
 0x19e   : > { %v1143_v36 = vmax.f32 %v2705_v12, %v1119_v33  ;;  %v1314_v43 = vperm.slane %v1144_v28, 0  ;;  %v1198_v45 = vsel %vm1197_vm14, %v1185_v25, %v1196_v41  ;;  %v1274_v12 = vsel %vm1195_vm13, %v1185_v25, %v1273_v42  ;;  %1521 = vmatpush.msra.mxu3 %v1503_v23  ;;  %v1501_v25 = vld [vmem:[#allocation10 + $0x68] sm:$0xff]  ;;  %v1519_v26 = vld [vmem:[#allocation10 + $0xf8] sm:$0xff] }
 0x19f   : > { %v1200_v34 = vsel %vm1199_vm15, %v1186_v39, %v1198_v45  ;;  %v1275_v51 = vsel %vm1197_vm14, %v1186_v39, %v1274_v12  ;;  %1541 = vmatpush.msra.mxu0 %v1519_v26  ;;  %v1499_v28 = vld [vmem:[#allocation10 + $0x58] sm:$0xff]  ;;  %v1493_v45 = vld [vmem:[#allocation10 + $0x28] sm:$0xff] }
 0x1a0   : > { %v1269_v44 = vperm.slane %v1143_v36, 0  ;;  %1865 = vmatmul.msk.f32.vlgmr.msra.gmra.mxu2 %vm1201_vm0, %v1200_v34  ;;  %1522 = vmatpush.msra.mxu3 %v1502_v24  ;;  %v1495_v36 = vld [vmem:[#allocation10 + $0x38] sm:$0xff] }
 0x1a1   : > { %1542 = vmatpush.msra.mxu0 %v1518_v27  ;;  %v1579_v26 = vld [vmem:[#allocation13 + $0x70] sm:$0xff]  ;;  %v1578_v27 = vld [vmem:[#allocation13 + $0x68] sm:$0xff] }
 0x1a2   : > { %v1320_v14 = vsel %vm1197_vm14, %v1269_v44, %v1319_v47  ;;  %v1364_v52 = vsel %vm1195_vm13, %v1269_v44, %v1363_v48  ;;  %v1276_v30 = vsel %vm1199_vm15, %v1269_v44, %v1275_v51  ;;  %1523 = vmatpush.msra.mxu3 %v1501_v25  ;;  %v1492_v51 = vld [vmem:[#allocation10 + $0x20] sm:$0xff] }
 0x1a3   : > { %1867 = vmatmul.msk.f32.vlgmr.msrb.gmra.mxu0 %vm1201_vm0, %v1276_v30  ;;  %v1321_v53 = vsel %vm1199_vm15, %v1314_v43, %v1320_v14  ;;  %v1365_v55 = vsel %vm1197_vm14, %v1314_v43, %v1364_v52  ;;  %v2375_v43 = vmov 1934713408  }
 0x1a4   : > { %1868 = vmatmul.msk.f32.vlgmr.msrb.gmra.mxu1 %vm1201_vm0, %v1321_v53  ;;  %v1366_v56 = vsel %vm1199_vm15, %v1359_v46, %v1365_v55  ;;  %1524 = vmatpush.msra.mxu3 %v1500_v3  ;;  %v1462_v44 = vunpack.c.l.s4 %v2375_v43  ;;  %v1491_v46 = vld [vmem:[#allocation10 + $0x18] sm:$0xff]  ;;  %v1619_v43 = vld [vmem:[%s2885_s9 + $0x68] sm:$0xff] }
 0x1a5   : > { %1543 = vmatpush.msra.mxu0 %v1517_v9  ;;  %v1580_v3 = vld [vmem:[#allocation13 + $0x78] sm:$0xff] }
 0x1a6   : > { %1525 = vmatpush.msra.mxu3 %v1499_v28  ;;  %v1463_v30 = vunpack.c.0.s8 %v1462_v44  ;;  %1582 = vmatpush.msra.mxu1 %v1580_v3  ;;  %v1577_v28 = vld [vmem:[#allocation13 + $0x60] sm:$0xff]  ;;  %v1576_v9 = vld [vmem:[#allocation13 + $0x58] sm:$0xff] }
 0x1a7   : > { %v1618_v44 = vld [vmem:[%s2885_s9 + $0x60] sm:$0xff] }
 0x1a8   : > { %1869 = vmatmul.msk.f32.vlgmr.msrb.gmra.mxu2 %vm1201_vm0, %v1366_v56  ;;  %1526 = vmatpush.msra.mxu3 %v1498_v29  ;;  %v1575_v29 = vld [vmem:[#allocation13 + $0x50] sm:$0xff] }
 0x1a9   : > { %1583 = vmatpush.msra.mxu1 %v1579_v26 }
 0x1aa   : > { %1527 = vmatpush.msra.mxu3 %v1497_v31  ;;  %v1574_v31 = vld [vmem:[#allocation13 + $0x48] sm:$0xff] }
 0x1ab   : > { %1584 = vmatpush.msra.mxu1 %v1578_v27 }
 0x1ac   : > { %1528 = vmatpush.msra.mxu3 %v1496_v32  ;;  %v1573_v32 = vld [vmem:[#allocation13 + $0x40] sm:$0xff] }
 0x1ad   : > { %1585 = vmatpush.msra.mxu1 %v1577_v28 }
 0x1ae   : > { %1529 = vmatpush.msra.mxu3 %v1495_v36  ;;  %v1570_v36 = vld [vmem:[#allocation13 + $0x28] sm:$0xff] }
 0x1af   : > { %1586 = vmatpush.msra.mxu1 %v1576_v9 }
 0x1b0   : > { %1530 = vmatpush.msra.mxu3 %v1494_v40  ;;  %v1565_v40 = vld [vmem:[#allocation13] sm:$0xff] }
 0x1b1   : > { %1587 = vmatpush.msra.mxu1 %v1575_v29 }
 0x1b2   : > { %1531 = vmatpush.msra.mxu3 %v1493_v45  ;;  %v1617_v45 = vld [vmem:[%s2885_s9 + $0x58] sm:$0xff] }
 0x1b3   : > { %1588 = vmatpush.msra.mxu1 %v1574_v31 }
 0x1b4   : > { %1532 = vmatpush.msra.mxu3 %v1492_v51  ;;  %v1614_v51 = vld [vmem:[%s2885_s9 + $0x40] sm:$0xff] }
 0x1b5   : > { %1589 = vmatpush.msra.mxu1 %v1573_v32 }
 0x1b6   : > { %1533 = vmatpush.msra.mxu3 %v1491_v46 }
 0x21f   : > { %v1252_v57 = vpop.f32.mrf.mxu3 }
 0x220   : > { %v1296_v50 = vpop.f32.mrf.mxu0 }
 0x221   : > { %v1341_v54 = vpop.f32.mrf.mxu1 }
 0x223   : > { %v1221_v58 = vpop.f32.mrf.mxu2 }
 0x224   : > { %v1253_v59 = vadd.f32 %v1252_v57, %v1221_v58 }
 0x226   : > { %v1299_v60 = vadd.f32 %v1296_v50, %v1253_v59  ;;  %v1490_v50 = vld [vmem:[#allocation10 + $0x10] sm:$0xff] }
 0x227   : > { %1534 = vmatpush.msra.mxu3 %v1490_v50  ;;  %v1610_v50 = vld [vmem:[%s2885_s9 + $0x20] sm:$0xff] }
 0x228   : > { %v1344_v61 = vadd.f32 %v1341_v54, %v1299_v60 }
 0x22b   : > { %v1386_v62 = vpop.f32.mrf.mxu2 }
 0x22c   : > { %v1389_v1 = vadd.f32 %v1386_v62, %v1344_v61  ;;  %v1489_v61 = vld [vmem:[#allocation10 + $0x8] sm:$0xff] }
 0x22d   : > { %1535 = vmatpush.msra.mxu3 %v1489_v61  ;;  %v1607_v61 = vld [vmem:[%s2885_s9 + $0x8] sm:$0xff] }
 0x22e   : > { %v1394_v63 = vadd.f32 %v2018_v49, %v1389_v1 }
 0x230   : > { %v1395_v2 = vmul.f32 0.5, %v1394_v63 }
 0x232   : > { %2031 = vtanh.f32 %v1395_v2 }
 0x238   : > { %v2032_v4 = vpop.eup %2031 }
 0x239   : > { %v1397_v5 = vmul.f32 0.5, %v2032_v4 }
 0x23b   : > { %v1398_v6 = vadd.f32 0.5, %v1397_v5  ;;  %v1488_v5 = vld [vmem:[#allocation10] sm:$0xff] }
 0x23c   : > { %1536 = vmatpush.msra.mxu3 %v1488_v5 }
 0x23d   : > { %v1401_v7 = vrot.slane %v1398_v6, 4  ;;  %v1402_v8 = vrot.slane %v1398_v6, 6  ;;  %v1400_v11 = vrot.slane %v1398_v6, 2  ;;  %v1870_v13 = vrot.slane %v1398_v6, 9 }
 0x23f   : > { %v1872_v15 = vrot.slane %v1401_v7, 9  ;;  %v1873_v16 = vrot.slane %v1402_v8, 9  ;;  %v1871_v17 = vrot.slane %v1400_v11, 9  ;;  %v1418_v20 = vmax.f32 %v1398_v6, %v1870_v13  ;;  %v1516_v6 = vld [vmem:[#allocation10 + $0xe0] sm:$0xff] }
 0x240   : > { %1544 = vmatpush.msra.mxu0 %v1516_v6  ;;  %v1512_v13 = vld [vmem:[#allocation10 + $0xc0] sm:$0xff] }
 0x241   : > { %v1420_v18 = vmax.f32 %v1401_v7, %v1872_v15  ;;  %v1421_v19 = vmax.f32 %v1402_v8, %v1873_v16  ;;  %v1419_v21 = vmax.f32 %v1400_v11, %v1871_v17  ;;  %v1515_v7 = vld [vmem:[#allocation10 + $0xd8] sm:$0xff]  ;;  %v1514_v8 = vld [vmem:[#allocation10 + $0xd0] sm:$0xff]  ;;  %v1513_v11 = vld [vmem:[#allocation10 + $0xc8] sm:$0xff] }
 0x242   : > { %1545 = vmatpush.msra.mxu0 %v1515_v7  ;;  %v1511_v15 = vld [vmem:[#allocation10 + $0xb8] sm:$0xff]  ;;  %v1510_v16 = vld [vmem:[#allocation10 + $0xb0] sm:$0xff]  ;;  %v1509_v17 = vld [vmem:[#allocation10 + $0xa8] sm:$0xff] }
 0x243   : > { %v2013_v0 = vpack.i.bf16 %v1420_v18, %v1421_v19  ;;  %v2008_v22 = vpack.i.bf16 %v1418_v20, %v1419_v21  ;;  %v1622_v7 = vld [vmem:[%s2886_s10] sm:$0x1] }
 0x244   : > { %1546 = vmatpush.msra.mxu0 %v1514_v8 }
 0x245   : > { %2014 = vrot.lane.b32.xlu1 %v2013_v0, %s2374_s4  ;;  %2009 = vrot.lane.b32.xlu0 %v2008_v22, %s2374_s4  ;;  %v1504_v0 = vld [vmem:[#allocation10 + $0x80] sm:$0xff] }
 0x246   : > { %1547 = vmatpush.msra.mxu0 %v1513_v11 }
 0x248   : > { %1548 = vmatpush.msra.mxu0 %v1512_v13 }
 0x24a   : > { %1549 = vmatpush.msra.mxu0 %v1511_v15 }
 0x24c   : > { %1550 = vmatpush.msra.mxu0 %v1510_v16 }
 0x24e   : > { %1551 = vmatpush.msra.mxu0 %v1509_v17 }
 0x2b7   : > { %v2015_v33 = vpop.permute.xlu1 %2014  ;;  %v2010_v35 = vpop.permute.xlu0 %2009 }
 0x2b8   : > { %v2017_v37 = vunpack.i.h.bf16 %v2015_v33  ;;  %v2016_v38 = vunpack.i.l.bf16 %v2015_v33  ;;  %v2012_v10 = vunpack.i.h.bf16 %v2010_v35  ;;  %v2011_v39 = vunpack.i.l.bf16 %v2010_v35  ;;  %v1572_v33 = vld [vmem:[#allocation13 + $0x38] sm:$0xff]  ;;  %v1571_v35 = vld [vmem:[#allocation13 + $0x30] sm:$0xff] }
 0x2b9   : > { %1590 = vmatpush.msra.mxu1 %v1572_v33 }
 0x2ba   : > { %v1441_v41 = vmax.f32 %v1421_v19, %v2016_v38  ;;  %v1439_v42 = vmax.f32 %v1419_v21, %v2011_v39  ;;  %v1440_v12 = vmax.f32 %v1420_v18, %v2017_v37  ;;  %v1438_v48 = vmax.f32 %v1418_v20, %v2012_v10  ;;  %v1508_v18 = vld [vmem:[#allocation10 + $0xa0] sm:$0xff]  ;;  %v1507_v19 = vld [vmem:[#allocation10 + $0x98] sm:$0xff]  ;;  %v1506_v20 = vld [vmem:[#allocation10 + $0x90] sm:$0xff] }
 0x2bb   : > { %1552 = vmatpush.msra.mxu0 %v1508_v18  ;;  %v1505_v21 = vld [vmem:[#allocation10 + $0x88] sm:$0xff]  ;;  %1591 = vmatpush.msra.mxu1 %v1571_v35  ;;  %v1568_v38 = vld [vmem:[#allocation13 + $0x18] sm:$0xff]  ;;  %v1567_v10 = vld [vmem:[#allocation13 + $0x10] sm:$0xff] }
 0x2bc   : > { %v1455_v47 = vrot.slane %v1441_v41, 7  ;;  %v1448_v34 = vrot.slane %v1439_v42, 7  ;;  %v1569_v37 = vld [vmem:[#allocation13 + $0x20] sm:$0xff]  ;;  %v1566_v39 = vld [vmem:[#allocation13 + $0x8] sm:$0xff]  ;;  %v1621_v41 = vld [vmem:[%s2885_s9 + $0x78] sm:$0xff] }
 0x2bd   : > { %1553 = vmatpush.msra.mxu0 %v1507_v19  ;;  %1592 = vmatpush.msra.mxu1 %v1570_v36  ;;  %v1620_v42 = vld [vmem:[%s2885_s9 + $0x70] sm:$0xff] }
 0x2be   : > { %v1456_v14 = vsel %vm1187_vm10, %v1455_v47, %v1440_v12  ;;  %v1449_v52 = vsel %vm1187_vm10, %v1448_v34, %v1438_v48  ;;  %1623 = vmatpush.msra.mxu2 %v1621_v41  ;;  %v1616_v12 = vld [vmem:[%s2885_s9 + $0x50] sm:$0xff]  ;;  %v1520_v48 = vld [vmem:[#allocation11] sm:$0x1] }
 0x2bf   : > { %v1457_v53 = vsel %vm1191_vm11, %v1455_v47, %v1456_v14  ;;  %v1450_v55 = vsel %vm1191_vm11, %v1448_v34, %v1449_v52  ;;  %1554 = vmatpush.msra.mxu0 %v1506_v20  ;;  %1593 = vmatpush.msra.mxu1 %v1569_v37 }
 0x2c0   : > { %v1458_v56 = vsel %vm1195_vm13, %v1455_v47, %v1457_v53  ;;  %v1451_v57 = vsel %vm1195_vm13, %v1448_v34, %v1450_v55  ;;  %1624 = vmatpush.msra.mxu2 %v1620_v42 }
 0x2c1   : > { %v1459_v58 = vsel %vm1199_vm15, %v1455_v47, %v1458_v56  ;;  %v1452_v59 = vsel %vm1199_vm15, %v1448_v34, %v1451_v57  ;;  %1555 = vmatpush.msra.mxu0 %v1505_v21  ;;  %1594 = vmatpush.msra.mxu1 %v1568_v38  ;;  %v1615_v47 = vld [vmem:[%s2885_s9 + $0x48] sm:$0xff]  ;;  %v1613_v57 = vld [vmem:[%s2885_s9 + $0x38] sm:$0xff] }
 0x2c2   : > { %v1472_v60 = vperm.slane %v1459_v58, %v1463_v30  ;;  %v1464_v54 = vperm.slane %v1452_v59, %v1463_v30  ;;  %1625 = vmatpush.msra.mxu2 %v1619_v43  ;;  %v1612_v58 = vld [vmem:[%s2885_s9 + $0x30] sm:$0xff]  ;;  %v1611_v59 = vld [vmem:[%s2885_s9 + $0x28] sm:$0xff] }
 0x2c3   : > { %1556 = vmatpush.msra.mxu0 %v1504_v0  ;;  %1595 = vmatpush.msra.mxu1 %v1567_v10 }
 0x2c4   : > { %v1473_v49 = vrot.slane %v1472_v60, 4  ;;  %v1465_v62 = vrot.slane %v1464_v54, 4  ;;  %1626 = vmatpush.msra.mxu2 %v1618_v44 }
 0x2c5   : > { %1596 = vmatpush.msra.mxu1 %v1566_v39 }
 0x2c6   : > { %v1474_v1 = vsel %vm1466_vm1, 0.0, %v1473_v49  ;;  %v1467_v63 = vsel %vm1466_vm1, 0.0, %v1465_v62  ;;  %1627 = vmatpush.msra.mxu2 %v1617_v45  ;;  %v1606_v49 = vld [vmem:[%s2885_s9] sm:$0xff] }
 0x2c7   : > { %v1481_v2 = vperm.slane %v1474_v1, 0  ;;  %v1476_v4 = vperm.slane %v1467_v63, 0  ;;  %1597 = vmatpush.msra.mxu1 %v1565_v40  ;;  %v1581_v62 = vld [vmem:[#allocation14] sm:$0x1] }
 0x2c8   : > { %1628 = vmatpush.msra.mxu2 %v1616_v12 }
 0x2c9   : > { %1482 = vrot.lane.b32.xlu0 %v1481_v2, %s2374_s4  ;;  %1477 = vrot.lane.b32.xlu2 %v1476_v4, %s2374_s4 }
 0x2ca   : > { %1629 = vmatpush.msra.mxu2 %v1615_v47 }
 0x2cc   : > { %1630 = vmatpush.msra.mxu2 %v1614_v51 }
 0x2ce   : > { %1631 = vmatpush.msra.mxu2 %v1613_v57 }
 0x2d0   : > { %1632 = vmatpush.msra.mxu2 %v1612_v58 }
 0x2d2   : > { %1633 = vmatpush.msra.mxu2 %v1611_v59 }
 0x2d4   : > { %1634 = vmatpush.msra.mxu2 %v1610_v50 }
 0x323   : > { %v1478_v22 = vpop.permute.xlu2 %1477 }
 0x324   : > { %v1486_v23 = vsel %vm1485_vm2, %v1464_v54, %v1478_v22  ;;  %v1608_v54 = vld [vmem:[%s2885_s9 + $0x10] sm:$0xff] }
 0x325   : > { %1537 = vmatmul.f32.vlgmr.msra.gmra.mxu3 %v1486_v23 }
 0x33b   : > { %v1483_v24 = vpop.permute.xlu0 %1482 }
 0x33c   : > { %v1487_v25 = vsel %vm1485_vm2, %v1472_v60, %v1483_v24  ;;  %v1609_v60 = vld [vmem:[%s2885_s9 + $0x18] sm:$0xff] }
 0x33d   : > { %1557 = vmatmul.f32.vlgmr.msra.gmra.mxu0 %v1487_v25  ;;  %1635 = vmatpush.msra.mxu2 %v1609_v60 }
 0x33f   : > { %1636 = vmatpush.msra.mxu2 %v1608_v54 }
 0x341   : > { %1637 = vmatpush.msra.mxu2 %v1607_v61 }
 0x343   : > { %1638 = vmatpush.msra.mxu2 %v1606_v49 }
 0x3a8   : > { %v1538_v34 = vpop.f32.mrf.mxu3 }
 0x3a9   : > { %v1539_v14 = vadd.f32 %v1538_v34, %v1520_v48 }
 0x3ba   : > { %v1558_v52 = vpop.f32.mrf.mxu0 }
 0x3bb   : > { %v1559_v30 = vadd.f32 %v1558_v52, %v1539_v14 }
 0x3bd   : > { %v1561_v53 = vmul.f32 0.5, %v1559_v30 }
 0x3bf   : > { %2033 = vtanh.f32 %v1561_v53 }
 0x3c5   : > { %v2034_v55 = vpop.eup %2033 }
 0x3c6   : > { %v1563_v46 = vmul.f32 0.5, %v2034_v55 }
 0x3c8   : > { %v1564_v56 = vadd.f32 0.5, %v1563_v46 }
 0x3ca   : > { %1598 = vmatmul.f32.vlgmr.msra.gmra.mxu1 %v1564_v56 }
 0x447   : > { %v1599_v1 = vpop.f32.mrf.mxu1 }
 0x448   : > { %v1600_v63 = vadd.f32 %v1599_v1, %v1581_v62 }
 0x44a   : > { %v1602_v2 = vmul.f32 0.5, %v1600_v63 }
 0x44c   : > { %2035 = vtanh.f32 %v1602_v2 }
 0x452   : > { %v2036_v4 = vpop.eup %2035 }
 0x453   : > { %v1604_v5 = vmul.f32 0.5, %v2036_v4 }
 0x455   : > { %v1605_v6 = vadd.f32 0.5, %v1604_v5 }
 0x457   : > { %1639 = vmatmul.f32.vlgmr.msra.gmra.mxu2 %v1605_v6 }
 0x4da   : > { %v1640_v8 = vpop.f32.mrf.mxu2 }
 0x4db   : > { %v1641_v11 = vadd.f32 %v1640_v8, %v1622_v7 }
 0x4dd   : > { %1643 = vst [vmem:[%s503_s24] sm:$0x1] %v1641_v11 }
 0x4de   : > { %2304 = shalt.err (!%p2301_p8)
}
 0x4df   : > { %1913 = dma.vmem_to_hbm [thread:$0]  (%p2474_p5), %s1656_s1, 16, %s1658_s16, %s1645_s22  }
 0x4e0 PF: > { %p1960_p9 = scmp.ge.s32.totalorder %s2359_s20, 2  ;;  %s1669_s23 = sand.u32 1, %s2347_s17  }
 0x4e1   : > { %s1670_s30 = scalar_lea.sflag [#allocation4], %s1669_s23 }
 0x4e2   : > { %p1941_p10 = pnand %p1960_p9, %p2478_p6 }
 0x4e4   : > { %p1942_p11 = pneg %p1941_p10 }
 0x4e6   : > { %2342 = dma.done.wait (%p1942_p11), %s1670_s30, 16  }
 0x4e7   : > { %2344 = vsyncadd (%p1942_p11), %s1670_s30, 4294967280  ;;  %s2906_s20 = sld [smem:[#allocation24_spill]]  ;;  %s2909_s17 = smov %s2351_s18 }
 0x4e8   : > { %s2907_s4 = sld [smem:[#allocation23_spill]] }
 0x4e9   : > { %s2908_s19 = sld [smem:[#allocation25_spill]] }
 0x4ed   : > { %p26_p12 = scmp.ge.s32.totalorder %s2906_s20, 4  }
 0x4ee   : > { %s2910_s18 = smov %s2907_s4 }
 0x4ef   :  { %28 = sbr.rel (!%p26_p12) target bundleno = 13 (0xd), region = 140 }
 0x4f4   :  { %1675 = vsyncpa [#allocation3], 1 }
 0x4f5   :  { %1677 = vsyncpa [#allocation3 + $0x1], 1 }
 0x4f6   :  { %1678 = vsyncpa [#allocation6], 1 }
 0x4f7   :  { %1679 = vsyncpa [#allocation9], 1 }
 0x4f8   :  { %1680 = vsyncpa [#allocation12], 1 }
 0x4f9   :  { %1681 = vsyncpa [#allocation15], 1 }
 0x4fa   :  { %1682 = vsyncpa [#allocation4], 1 }
 0x4fb   :  { %1684 = vsyncpa [#allocation4 + $0x1], 1 }

</bundles_post_ra>
